<compile_context>
chip_gen: v6e
topology: v6e:2x2x1
jax: 0.10.0
libtpu: 0.0.40
codegen_flags: <defaults>
</compile_context>

<pallas_src>
import functools
import math

import numpy as np
import jax
import jax.numpy as jnp
from jax import lax
from jax.experimental import pallas as pl
from jax.experimental.pallas import tpu as pltpu


# ----------------------------------------------------------------------------
# Deterministic "parameter" construction (mirrors gaussian()/create_window())
# ----------------------------------------------------------------------------
def gaussian_np(window_size: int, sigma: float) -> np.ndarray:
    g = np.array(
        [math.exp(-((x - window_size // 2) ** 2) / float(2 * sigma ** 2))
         for x in range(window_size)],
        dtype=np.float32,
    )
    return g / g.sum()


def create_window_np(window_size: int) -> np.ndarray:
    g = gaussian_np(window_size, 1.5)
    return np.outer(g, g).astype(np.float32)


def conv_band_matrix_np(w1d: np.ndarray, n: int) -> np.ndarray:
    """(n, n) matrix M with M[i, j] = w1d[pad + i - j]; x @ M == zero-padded
    'same' 1-D convolution of each row of x with w1d."""
    ws = w1d.shape[0]
    pad = ws // 2
    M = np.zeros((n, n), dtype=np.float32)
    for j in range(n):
        for i in range(max(0, j - pad), min(n, j + pad + 1)):
            M[i, j] = w1d[pad + i - j]
    return M


def _pick_channel_block(G: int, W: int, max_lanes: int = 512,
                        min_blocks: int = 4) -> int:
    """Channels folded per grid step.  Prefer >= min_blocks grid steps
    (megacore sharding + pipeline double-buffering), then the largest channel
    block (lane density, fewer per-step overheads), with the block-diagonal
    row-blur matrix capped at max_lanes lanes."""
    divisors = [d for d in range(1, G + 1) if G % d == 0]
    best = 1
    for bc in divisors:
        if bc > 1 and bc * W > max_lanes:
            continue
        if G // bc >= min_blocks:
            best = bc
    if best == 1:
        for bc in divisors:
            if bc > 1 and bc * W > max_lanes:
                continue
            if G // bc >= 2:
                best = bc
    return best


# ----------------------------------------------------------------------------
# bf16x3 matmul helper (== lax.Precision.HIGH, three MXU passes, f32 accum)
# ----------------------------------------------------------------------------
def _split_bf16(x):
    hi = x.astype(jnp.bfloat16)
    lo = (x - hi.astype(jnp.float32)).astype(jnp.bfloat16)
    return hi, lo


def _mm3(lhs, rhs):
    """lhs/rhs are (hi, lo) bf16 pairs; returns f32 lhs@rhs with ~1e-5 rel err
    (hi*hi + lo*hi + hi*lo; the lo*lo term is below f32 noise here)."""
    lh, ll = lhs
    rh, rl = rhs
    out = jnp.dot(lh, rh, preferred_element_type=jnp.float32)
    out = out + jnp.dot(ll, rh, preferred_element_type=jnp.float32)
    out = out + jnp.dot(lh, rl, preferred_element_type=jnp.float32)
    return out


# ----------------------------------------------------------------------------
# Pallas kernel: one block of Bc channel slices per grid step
# ----------------------------------------------------------------------------
def _ssim_block_kernel(i1_ref, i2_ref, colmat_ref, rowmat_ref, out_ref, *,
                       H, W, Bc, C1, C2):
    # Constant band matrices, split once into bf16 hi/lo halves.
    col_sp = _split_bf16(colmat_ref[...])     # (H, H)       column-blur matrix
    row_sp = _split_bf16(rowmat_ref[...])     # (BcW, BcW)   block-diag row blur

    x1 = i1_ref[...]                          # (Bc, H, W) raw (unpadded) block
    x2 = i2_ref[...]

    # Fold the Bc channels into the lane axis -> (H, Bc*W): lane-dense row-blur
    # matmul and downstream elementwise math (Bc*W lanes instead of W).
    def fold(x):
        if Bc == 1:
            return x[0]
        return jnp.concatenate([x[b] for b in range(Bc)], axis=-1)

    x1f = fold(x1)                            # (H, Bc*W)
    x2f = fold(x2)

    def blur(m):
        # Separable "same" Gaussian blur; zero padding is baked into the band
        # matrices, both passes on the MXU at ~Precision.HIGH accuracy.
        col = _mm3(col_sp, _split_bf16(m))    # (H, H) @ (H, Bc*W)   column pass
        return _mm3(_split_bf16(col), row_sp)  # (H, Bc*W) @ (Bc*W, Bc*W)  row

    # Maps are blurred one at a time to keep the live working set small.
    mu1 = blur(x1f)
    mu2 = blur(x2f)
    e11 = blur(x1f * x1f)
    e22 = blur(x2f * x2f)
    e12 = blur(x1f * x2f)

    mu1_sq = mu1 * mu1
    mu2_sq = mu2 * mu2
    mu1_mu2 = mu1 * mu2
    sigma1_sq = e11 - mu1_sq
    sigma2_sq = e22 - mu2_sq
    sigma12 = e12 - mu1_mu2

    v1 = 2.0 * sigma12 + C2
    v2 = sigma1_sq + sigma2_sq + C2 + 1e-6      # matches the torch formula
    num = (2.0 * mu1_mu2 + C1) * v1
    den = (mu1_sq + mu2_sq + C1) * v2           # strictly positive (>= C1*C2)

    # Divide on the EUP; one Newton step restores ~f32 accuracy.
    r = pl.reciprocal(den, approx=True)
    r = r * (2.0 - den * r)
    ssim_map = num * r

    # Per-block partial sum broadcast into a lane-dense (1, 8, 128) slab so the
    # store is an unmasked full-tile vst; the wrapper reads [:, 0, 0].
    s = jnp.sum(ssim_map)
    out_ref[...] = jnp.full(out_ref.shape, s, dtype=out_ref.dtype)


# ----------------------------------------------------------------------------
# Wrapper (equivalent of SSIM(window_size=11, size_average=True).forward)
# ----------------------------------------------------------------------------
def ssim_pallas(img1, img2, window_size=11, val_range=1.0):
    img1 = img1.astype(jnp.float32)
    img2 = img2.astype(jnp.float32)
    N, C, H, W = img1.shape
    ws = window_size
    G = N * C
    Bc = _pick_channel_block(G, W)
    nblk = G // Bc

    L = val_range
    C1 = (0.01 * L) ** 2
    C2 = (0.03 * L) ** 2

    g1d = gaussian_np(ws, 1.5)
    m_h = conv_band_matrix_np(g1d, H)              # column-blur band (H, H)
    m_w = conv_band_matrix_np(g1d, W)              # row-blur band    (W, W)
    colmat = jnp.asarray(np.ascontiguousarray(m_h.T))
    rowmat = jnp.asarray(np.kron(np.eye(Bc, dtype=np.float32), m_w))  # (BcW,BcW)

    # Free reshapes only — no padding / transpose HBM pass before the kernel.
    i1 = img1.reshape(G, H, W)
    i2 = img2.reshape(G, H, W)

    kernel = functools.partial(_ssim_block_kernel,
                               H=H, W=W, Bc=Bc, C1=C1, C2=C2)

    # Explicit scoped-VMEM budget (v7x has only 64 MiB physical VMEM).
    est = 4 * (2 * 2 * Bc * H * W                  # 2 inputs x 2 pipeline bufs
               + 2 * (H * H + (Bc * W) ** 2)       # band matrices
               + 2 * 8 * 128                       # output slab
               + 24 * H * Bc * W)                  # live intermediates (generous)
    vmem_limit = int(min(48 * 2 ** 20, max(8 * 2 ** 20, 8 * est)))

    # TODO(synk): for production-size images additionally tile H (2*pad-row
    # halo folded into a per-tile column band matrix) and W; on v5e / very
    # wide W switch the row blur to pltpu.roll + FMA instead of the dense band
    # matmul to keep its weak MXU off the critical path.
    out = pl.pallas_call(
        kernel,
        out_shape=jax.ShapeDtypeStruct((nblk, 8, 128), jnp.float32),
        grid_spec=pltpu.PrefetchScalarGridSpec(
            num_scalar_prefetch=0,
            grid=(nblk,),
            in_specs=[
                pl.BlockSpec((Bc, H, W), lambda g: (g, 0, 0)),
                pl.BlockSpec((Bc, H, W), lambda g: (g, 0, 0)),
                pl.BlockSpec((H, H), lambda g: (0, 0)),          # shared const
                pl.BlockSpec((Bc * W, Bc * W), lambda g: (0, 0)),  # shared const
            ],
            out_specs=pl.BlockSpec((1, 8, 128), lambda g: (g, 0, 0)),
        ),
        compiler_params=pltpu.CompilerParams(
            # Independent per-block partial sums -> megacore can shard the
            # channel-block axis; >= 4 steps so pipelining actually engages.
            dimension_semantics=("parallel",),
            vmem_limit_bytes=vmem_limit,
        ),
    )(i1, i2, colmat, rowmat)

    partial_sums = out[:, 0, 0]                      # (nblk,)
    return jnp.sum(partial_sums) / (N * C * H * W)   # size_average=True


# ----------------------------------------------------------------------------
# Pure-JAX reference (mirrors the torch code with lax.conv, depthwise groups)
# ----------------------------------------------------------------------------
def ssim_ref(img1, img2, window_size=11, val_range=1.0):
    N, C, H, W = img1.shape
    pad = window_size // 2
    L = val_range
    C1 = (0.01 * L) ** 2
    C2 = (0.03 * L) ** 2
    w2d = jnp.asarray(create_window_np(window_size))
    w = jnp.broadcast_to(w2d, (C, 1, window_size, window_size))

    def conv(x):
        return lax.conv_general_dilated(
            x, w, (1, 1), [(pad, pad), (pad, pad)],
            feature_group_count=C,
            dimension_numbers=("NCHW", "OIHW", "NCHW"),
            precision=lax.Precision.HIGHEST,
        )

    mu1, mu2 = conv(img1), conv(img2)
    mu1_sq, mu2_sq, mu1_mu2 = mu1 * mu1, mu2 * mu2, mu1 * mu2
    sigma1_sq = conv(img1 * img1) - mu1_sq
    sigma2_sq = conv(img2 * img2) - mu2_sq
    sigma12 = conv(img1 * img2) - mu1_mu2
    v1 = 2.0 * sigma12 + C2
    v2 = sigma1_sq + sigma2_sq + C2 + 1e-6
    ssim_map = (2.0 * mu1_mu2 + C1) * v1 / ((mu1_sq + mu2_sq + C1) * v2)
    return jnp.mean(ssim_map)


if __name__ == "__main__":
    key = jax.random.PRNGKey(0)
    k1, k2 = jax.random.split(key)
    N, C, H, W = 2, 4, 16, 16          # inputs must lie in [0, 1]
    img1 = jax.random.uniform(k1, (N, C, H, W), dtype=jnp.float32)
    img2 = jax.random.uniform(k2, (N, C, H, W), dtype=jnp.float32)

    out = ssim_pallas(img1, img2, window_size=11, val_range=1.0)
    out = jax.block_until_ready(out)

    ref = jax.block_until_ready(ssim_ref(img1, img2, window_size=11, val_range=1.0))
    np.testing.assert_allclose(np.asarray(out), np.asarray(ref),
                               rtol=5e-4, atol=5e-5)

    print("KERNEL_OK")
</pallas_src>

<mosaic_0001>
module attributes {stable_mosaic.version = 11 : i64} {
  func.func @_ssim_block_kernel(%arg0: i32, %arg1: memref<2x16x16xf32, #tpu.memory_space<vmem>>, %arg2: memref<2x16x16xf32, #tpu.memory_space<vmem>>, %arg3: memref<16x16xf32, #tpu.memory_space<vmem>>, %arg4: memref<32x32xf32, #tpu.memory_space<vmem>>, %arg5: memref<1x8x128xf32, #tpu.memory_space<vmem>>) attributes {dimension_semantics = [#tpu.dimension_semantics<parallel>], iteration_bounds = array<i64: 4>, scalar_prefetch = 0 : i64, scratch_operands = 0 : i64, tpu.core_type = #tpu.core_type<tc>, window_params = [{transform_indices = @transform_0, window_bounds = array<i64: 2, 16, 16>}, {transform_indices = @transform_1, window_bounds = array<i64: 2, 16, 16>}, {pipeline_mode = #tpu.pipeline_mode<synchronous>, transform_indices = @transform_2, window_bounds = array<i64: 16, 16>}, {pipeline_mode = #tpu.pipeline_mode<synchronous>, transform_indices = @transform_3, window_bounds = array<i64: 32, 32>}, {transform_indices = @transform_4, window_bounds = array<i64: 1, 8, 128>}]} {
    %c0 = arith.constant 0 : index
    %c0_0 = arith.constant 0 : index
    %0 = vector.load %arg3[%c0, %c0_0] : memref<16x16xf32, #tpu.memory_space<vmem>>, vector<16x16xf32>
    %1 = arith.truncf %0 : vector<16x16xf32> to vector<16x16xbf16>
    %2 = arith.extf %1 : vector<16x16xbf16> to vector<16x16xf32>
    %3 = arith.subf %0, %2 : vector<16x16xf32>
    %4 = arith.truncf %3 : vector<16x16xf32> to vector<16x16xbf16>
    %c0_1 = arith.constant 0 : index
    %c0_2 = arith.constant 0 : index
    %5 = vector.load %arg4[%c0_1, %c0_2] : memref<32x32xf32, #tpu.memory_space<vmem>>, vector<32x32xf32>
    %6 = arith.truncf %5 : vector<32x32xf32> to vector<32x32xbf16>
    %7 = arith.extf %6 : vector<32x32xbf16> to vector<32x32xf32>
    %8 = arith.subf %5, %7 : vector<32x32xf32>
    %9 = arith.truncf %8 : vector<32x32xf32> to vector<32x32xbf16>
    %c0_3 = arith.constant 0 : index
    %c0_4 = arith.constant 0 : index
    %c0_5 = arith.constant 0 : index
    %10 = vector.load %arg1[%c0_3, %c0_4, %c0_5] : memref<2x16x16xf32, #tpu.memory_space<vmem>>, vector<2x16x16xf32>
    %c0_6 = arith.constant 0 : index
    %c0_7 = arith.constant 0 : index
    %c0_8 = arith.constant 0 : index
    %11 = vector.load %arg2[%c0_6, %c0_7, %c0_8] : memref<2x16x16xf32, #tpu.memory_space<vmem>>, vector<2x16x16xf32>
    %12 = vector.extract_strided_slice %10 {offsets = [0, 0, 0], sizes = [1, 16, 16], strides = [1, 1, 1]} : vector<2x16x16xf32> to vector<1x16x16xf32>
    %13 = vector.shape_cast %12 : vector<1x16x16xf32> to vector<16x16xf32>
    %14 = vector.extract_strided_slice %10 {offsets = [1, 0, 0], sizes = [1, 16, 16], strides = [1, 1, 1]} : vector<2x16x16xf32> to vector<1x16x16xf32>
    %15 = vector.shape_cast %14 : vector<1x16x16xf32> to vector<16x16xf32>
    %16 = tpu.concatenate %13, %15 in 1 : vector<16x16xf32>, vector<16x16xf32> -> vector<16x32xf32>
    %17 = vector.extract_strided_slice %11 {offsets = [0, 0, 0], sizes = [1, 16, 16], strides = [1, 1, 1]} : vector<2x16x16xf32> to vector<1x16x16xf32>
    %18 = vector.shape_cast %17 : vector<1x16x16xf32> to vector<16x16xf32>
    %19 = vector.extract_strided_slice %11 {offsets = [1, 0, 0], sizes = [1, 16, 16], strides = [1, 1, 1]} : vector<2x16x16xf32> to vector<1x16x16xf32>
    %20 = vector.shape_cast %19 : vector<1x16x16xf32> to vector<16x16xf32>
    %21 = tpu.concatenate %18, %20 in 1 : vector<16x16xf32>, vector<16x16xf32> -> vector<16x32xf32>
    %22 = arith.truncf %16 : vector<16x32xf32> to vector<16x32xbf16>
    %23 = arith.extf %22 : vector<16x32xbf16> to vector<16x32xf32>
    %24 = arith.subf %16, %23 : vector<16x32xf32>
    %25 = arith.truncf %24 : vector<16x32xf32> to vector<16x32xbf16>
    %cst = arith.constant dense<0.000000e+00> : vector<16x32xf32>
    %26 = tpu.matmul %1, %22, %cst {dimension_numbers = #tpu.dot_dimension_numbers<[1], [0], [0], [1], [0, 0, 1, 1], [], []>} : vector<16x16xbf16>, vector<16x32xbf16>, vector<16x32xf32> -> vector<16x32xf32>
    %cst_9 = arith.constant dense<0.000000e+00> : vector<16x32xf32>
    %27 = tpu.matmul %4, %22, %cst_9 {dimension_numbers = #tpu.dot_dimension_numbers<[1], [0], [0], [1], [0, 0, 1, 1], [], []>} : vector<16x16xbf16>, vector<16x32xbf16>, vector<16x32xf32> -> vector<16x32xf32>
    %28 = arith.addf %26, %27 : vector<16x32xf32>
    %cst_10 = arith.constant dense<0.000000e+00> : vector<16x32xf32>
    %29 = tpu.matmul %1, %25, %cst_10 {dimension_numbers = #tpu.dot_dimension_numbers<[1], [0], [0], [1], [0, 0, 1, 1], [], []>} : vector<16x16xbf16>, vector<16x32xbf16>, vector<16x32xf32> -> vector<16x32xf32>
    %30 = arith.addf %28, %29 : vector<16x32xf32>
    %31 = arith.truncf %30 : vector<16x32xf32> to vector<16x32xbf16>
    %32 = arith.extf %31 : vector<16x32xbf16> to vector<16x32xf32>
    %33 = arith.subf %30, %32 : vector<16x32xf32>
    %34 = arith.truncf %33 : vector<16x32xf32> to vector<16x32xbf16>
    %cst_11 = arith.constant dense<0.000000e+00> : vector<16x32xf32>
    %35 = tpu.matmul %31, %6, %cst_11 {dimension_numbers = #tpu.dot_dimension_numbers<[1], [0], [0], [1], [0, 0, 1, 1], [], []>} : vector<16x32xbf16>, vector<32x32xbf16>, vector<16x32xf32> -> vector<16x32xf32>
    %cst_12 = arith.constant dense<0.000000e+00> : vector<16x32xf32>
    %36 = tpu.matmul %34, %6, %cst_12 {dimension_numbers = #tpu.dot_dimension_numbers<[1], [0], [0], [1], [0, 0, 1, 1], [], []>} : vector<16x32xbf16>, vector<32x32xbf16>, vector<16x32xf32> -> vector<16x32xf32>
    %37 = arith.addf %35, %36 : vector<16x32xf32>
    %cst_13 = arith.constant dense<0.000000e+00> : vector<16x32xf32>
    %38 = tpu.matmul %31, %9, %cst_13 {dimension_numbers = #tpu.dot_dimension_numbers<[1], [0], [0], [1], [0, 0, 1, 1], [], []>} : vector<16x32xbf16>, vector<32x32xbf16>, vector<16x32xf32> -> vector<16x32xf32>
    %39 = arith.addf %37, %38 : vector<16x32xf32>
    %40 = arith.truncf %21 : vector<16x32xf32> to vector<16x32xbf16>
    %41 = arith.extf %40 : vector<16x32xbf16> to vector<16x32xf32>
    %42 = arith.subf %21, %41 : vector<16x32xf32>
    %43 = arith.truncf %42 : vector<16x32xf32> to vector<16x32xbf16>
    %cst_14 = arith.constant dense<0.000000e+00> : vector<16x32xf32>
    %44 = tpu.matmul %1, %40, %cst_14 {dimension_numbers = #tpu.dot_dimension_numbers<[1], [0], [0], [1], [0, 0, 1, 1], [], []>} : vector<16x16xbf16>, vector<16x32xbf16>, vector<16x32xf32> -> vector<16x32xf32>
    %cst_15 = arith.constant dense<0.000000e+00> : vector<16x32xf32>
    %45 = tpu.matmul %4, %40, %cst_15 {dimension_numbers = #tpu.dot_dimension_numbers<[1], [0], [0], [1], [0, 0, 1, 1], [], []>} : vector<16x16xbf16>, vector<16x32xbf16>, vector<16x32xf32> -> vector<16x32xf32>
    %46 = arith.addf %44, %45 : vector<16x32xf32>
    %cst_16 = arith.constant dense<0.000000e+00> : vector<16x32xf32>
    %47 = tpu.matmul %1, %43, %cst_16 {dimension_numbers = #tpu.dot_dimension_numbers<[1], [0], [0], [1], [0, 0, 1, 1], [], []>} : vector<16x16xbf16>, vector<16x32xbf16>, vector<16x32xf32> -> vector<16x32xf32>
    %48 = arith.addf %46, %47 : vector<16x32xf32>
    %49 = arith.truncf %48 : vector<16x32xf32> to vector<16x32xbf16>
    %50 = arith.extf %49 : vector<16x32xbf16> to vector<16x32xf32>
    %51 = arith.subf %48, %50 : vector<16x32xf32>
    %52 = arith.truncf %51 : vector<16x32xf32> to vector<16x32xbf16>
    %cst_17 = arith.constant dense<0.000000e+00> : vector<16x32xf32>
    %53 = tpu.matmul %49, %6, %cst_17 {dimension_numbers = #tpu.dot_dimension_numbers<[1], [0], [0], [1], [0, 0, 1, 1], [], []>} : vector<16x32xbf16>, vector<32x32xbf16>, vector<16x32xf32> -> vector<16x32xf32>
    %cst_18 = arith.constant dense<0.000000e+00> : vector<16x32xf32>
    %54 = tpu.matmul %52, %6, %cst_18 {dimension_numbers = #tpu.dot_dimension_numbers<[1], [0], [0], [1], [0, 0, 1, 1], [], []>} : vector<16x32xbf16>, vector<32x32xbf16>, vector<16x32xf32> -> vector<16x32xf32>
    %55 = arith.addf %53, %54 : vector<16x32xf32>
    %cst_19 = arith.constant dense<0.000000e+00> : vector<16x32xf32>
    %56 = tpu.matmul %49, %9, %cst_19 {dimension_numbers = #tpu.dot_dimension_numbers<[1], [0], [0], [1], [0, 0, 1, 1], [], []>} : vector<16x32xbf16>, vector<32x32xbf16>, vector<16x32xf32> -> vector<16x32xf32>
    %57 = arith.addf %55, %56 : vector<16x32xf32>
    %58 = arith.mulf %16, %16 : vector<16x32xf32>
    %59 = arith.truncf %58 : vector<16x32xf32> to vector<16x32xbf16>
    %60 = arith.extf %59 : vector<16x32xbf16> to vector<16x32xf32>
    %61 = arith.subf %58, %60 : vector<16x32xf32>
    %62 = arith.truncf %61 : vector<16x32xf32> to vector<16x32xbf16>
    %cst_20 = arith.constant dense<0.000000e+00> : vector<16x32xf32>
    %63 = tpu.matmul %1, %59, %cst_20 {dimension_numbers = #tpu.dot_dimension_numbers<[1], [0], [0], [1], [0, 0, 1, 1], [], []>} : vector<16x16xbf16>, vector<16x32xbf16>, vector<16x32xf32> -> vector<16x32xf32>
    %cst_21 = arith.constant dense<0.000000e+00> : vector<16x32xf32>
    %64 = tpu.matmul %4, %59, %cst_21 {dimension_numbers = #tpu.dot_dimension_numbers<[1], [0], [0], [1], [0, 0, 1, 1], [], []>} : vector<16x16xbf16>, vector<16x32xbf16>, vector<16x32xf32> -> vector<16x32xf32>
    %65 = arith.addf %63, %64 : vector<16x32xf32>
    %cst_22 = arith.constant dense<0.000000e+00> : vector<16x32xf32>
    %66 = tpu.matmul %1, %62, %cst_22 {dimension_numbers = #tpu.dot_dimension_numbers<[1], [0], [0], [1], [0, 0, 1, 1], [], []>} : vector<16x16xbf16>, vector<16x32xbf16>, vector<16x32xf32> -> vector<16x32xf32>
    %67 = arith.addf %65, %66 : vector<16x32xf32>
    %68 = arith.truncf %67 : vector<16x32xf32> to vector<16x32xbf16>
    %69 = arith.extf %68 : vector<16x32xbf16> to vector<16x32xf32>
    %70 = arith.subf %67, %69 : vector<16x32xf32>
    %71 = arith.truncf %70 : vector<16x32xf32> to vector<16x32xbf16>
    %cst_23 = arith.constant dense<0.000000e+00> : vector<16x32xf32>
    %72 = tpu.matmul %68, %6, %cst_23 {dimension_numbers = #tpu.dot_dimension_numbers<[1], [0], [0], [1], [0, 0, 1, 1], [], []>} : vector<16x32xbf16>, vector<32x32xbf16>, vector<16x32xf32> -> vector<16x32xf32>
    %cst_24 = arith.constant dense<0.000000e+00> : vector<16x32xf32>
    %73 = tpu.matmul %71, %6, %cst_24 {dimension_numbers = #tpu.dot_dimension_numbers<[1], [0], [0], [1], [0, 0, 1, 1], [], []>} : vector<16x32xbf16>, vector<32x32xbf16>, vector<16x32xf32> -> vector<16x32xf32>
    %74 = arith.addf %72, %73 : vector<16x32xf32>
    %cst_25 = arith.constant dense<0.000000e+00> : vector<16x32xf32>
    %75 = tpu.matmul %68, %9, %cst_25 {dimension_numbers = #tpu.dot_dimension_numbers<[1], [0], [0], [1], [0, 0, 1, 1], [], []>} : vector<16x32xbf16>, vector<32x32xbf16>, vector<16x32xf32> -> vector<16x32xf32>
    %76 = arith.addf %74, %75 : vector<16x32xf32>
    %77 = arith.mulf %21, %21 : vector<16x32xf32>
    %78 = arith.truncf %77 : vector<16x32xf32> to vector<16x32xbf16>
    %79 = arith.extf %78 : vector<16x32xbf16> to vector<16x32xf32>
    %80 = arith.subf %77, %79 : vector<16x32xf32>
    %81 = arith.truncf %80 : vector<16x32xf32> to vector<16x32xbf16>
    %cst_26 = arith.constant dense<0.000000e+00> : vector<16x32xf32>
    %82 = tpu.matmul %1, %78, %cst_26 {dimension_numbers = #tpu.dot_dimension_numbers<[1], [0], [0], [1], [0, 0, 1, 1], [], []>} : vector<16x16xbf16>, vector<16x32xbf16>, vector<16x32xf32> -> vector<16x32xf32>
    %cst_27 = arith.constant dense<0.000000e+00> : vector<16x32xf32>
    %83 = tpu.matmul %4, %78, %cst_27 {dimension_numbers = #tpu.dot_dimension_numbers<[1], [0], [0], [1], [0, 0, 1, 1], [], []>} : vector<16x16xbf16>, vector<16x32xbf16>, vector<16x32xf32> -> vector<16x32xf32>
    %84 = arith.addf %82, %83 : vector<16x32xf32>
    %cst_28 = arith.constant dense<0.000000e+00> : vector<16x32xf32>
    %85 = tpu.matmul %1, %81, %cst_28 {dimension_numbers = #tpu.dot_dimension_numbers<[1], [0], [0], [1], [0, 0, 1, 1], [], []>} : vector<16x16xbf16>, vector<16x32xbf16>, vector<16x32xf32> -> vector<16x32xf32>
    %86 = arith.addf %84, %85 : vector<16x32xf32>
    %87 = arith.truncf %86 : vector<16x32xf32> to vector<16x32xbf16>
    %88 = arith.extf %87 : vector<16x32xbf16> to vector<16x32xf32>
    %89 = arith.subf %86, %88 : vector<16x32xf32>
    %90 = arith.truncf %89 : vector<16x32xf32> to vector<16x32xbf16>
    %cst_29 = arith.constant dense<0.000000e+00> : vector<16x32xf32>
    %91 = tpu.matmul %87, %6, %cst_29 {dimension_numbers = #tpu.dot_dimension_numbers<[1], [0], [0], [1], [0, 0, 1, 1], [], []>} : vector<16x32xbf16>, vector<32x32xbf16>, vector<16x32xf32> -> vector<16x32xf32>
    %cst_30 = arith.constant dense<0.000000e+00> : vector<16x32xf32>
    %92 = tpu.matmul %90, %6, %cst_30 {dimension_numbers = #tpu.dot_dimension_numbers<[1], [0], [0], [1], [0, 0, 1, 1], [], []>} : vector<16x32xbf16>, vector<32x32xbf16>, vector<16x32xf32> -> vector<16x32xf32>
    %93 = arith.addf %91, %92 : vector<16x32xf32>
    %cst_31 = arith.constant dense<0.000000e+00> : vector<16x32xf32>
    %94 = tpu.matmul %87, %9, %cst_31 {dimension_numbers = #tpu.dot_dimension_numbers<[1], [0], [0], [1], [0, 0, 1, 1], [], []>} : vector<16x32xbf16>, vector<32x32xbf16>, vector<16x32xf32> -> vector<16x32xf32>
    %95 = arith.addf %93, %94 : vector<16x32xf32>
    %96 = arith.mulf %16, %21 : vector<16x32xf32>
    %97 = arith.truncf %96 : vector<16x32xf32> to vector<16x32xbf16>
    %98 = arith.extf %97 : vector<16x32xbf16> to vector<16x32xf32>
    %99 = arith.subf %96, %98 : vector<16x32xf32>
    %100 = arith.truncf %99 : vector<16x32xf32> to vector<16x32xbf16>
    %cst_32 = arith.constant dense<0.000000e+00> : vector<16x32xf32>
    %101 = tpu.matmul %1, %97, %cst_32 {dimension_numbers = #tpu.dot_dimension_numbers<[1], [0], [0], [1], [0, 0, 1, 1], [], []>} : vector<16x16xbf16>, vector<16x32xbf16>, vector<16x32xf32> -> vector<16x32xf32>
    %cst_33 = arith.constant dense<0.000000e+00> : vector<16x32xf32>
    %102 = tpu.matmul %4, %97, %cst_33 {dimension_numbers = #tpu.dot_dimension_numbers<[1], [0], [0], [1], [0, 0, 1, 1], [], []>} : vector<16x16xbf16>, vector<16x32xbf16>, vector<16x32xf32> -> vector<16x32xf32>
    %103 = arith.addf %101, %102 : vector<16x32xf32>
    %cst_34 = arith.constant dense<0.000000e+00> : vector<16x32xf32>
    %104 = tpu.matmul %1, %100, %cst_34 {dimension_numbers = #tpu.dot_dimension_numbers<[1], [0], [0], [1], [0, 0, 1, 1], [], []>} : vector<16x16xbf16>, vector<16x32xbf16>, vector<16x32xf32> -> vector<16x32xf32>
    %105 = arith.addf %103, %104 : vector<16x32xf32>
    %106 = arith.truncf %105 : vector<16x32xf32> to vector<16x32xbf16>
    %107 = arith.extf %106 : vector<16x32xbf16> to vector<16x32xf32>
    %108 = arith.subf %105, %107 : vector<16x32xf32>
    %109 = arith.truncf %108 : vector<16x32xf32> to vector<16x32xbf16>
    %cst_35 = arith.constant dense<0.000000e+00> : vector<16x32xf32>
    %110 = tpu.matmul %106, %6, %cst_35 {dimension_numbers = #tpu.dot_dimension_numbers<[1], [0], [0], [1], [0, 0, 1, 1], [], []>} : vector<16x32xbf16>, vector<32x32xbf16>, vector<16x32xf32> -> vector<16x32xf32>
    %cst_36 = arith.constant dense<0.000000e+00> : vector<16x32xf32>
    %111 = tpu.matmul %109, %6, %cst_36 {dimension_numbers = #tpu.dot_dimension_numbers<[1], [0], [0], [1], [0, 0, 1, 1], [], []>} : vector<16x32xbf16>, vector<32x32xbf16>, vector<16x32xf32> -> vector<16x32xf32>
    %112 = arith.addf %110, %111 : vector<16x32xf32>
    %cst_37 = arith.constant dense<0.000000e+00> : vector<16x32xf32>
    %113 = tpu.matmul %106, %9, %cst_37 {dimension_numbers = #tpu.dot_dimension_numbers<[1], [0], [0], [1], [0, 0, 1, 1], [], []>} : vector<16x32xbf16>, vector<32x32xbf16>, vector<16x32xf32> -> vector<16x32xf32>
    %114 = arith.addf %112, %113 : vector<16x32xf32>
    %115 = arith.mulf %39, %39 : vector<16x32xf32>
    %116 = arith.mulf %57, %57 : vector<16x32xf32>
    %117 = arith.mulf %39, %57 : vector<16x32xf32>
    %118 = arith.subf %76, %115 : vector<16x32xf32>
    %119 = arith.subf %95, %116 : vector<16x32xf32>
    %120 = arith.subf %114, %117 : vector<16x32xf32>
    %cst_38 = arith.constant 2.000000e+00 : f32
    %121 = vector.broadcast %cst_38 : f32 to vector<16x32xf32>
    %122 = arith.mulf %121, %120 : vector<16x32xf32>
    %cst_39 = arith.constant 8.99999984E-4 : f32
    %123 = vector.broadcast %cst_39 : f32 to vector<16x32xf32>
    %124 = arith.addf %122, %123 : vector<16x32xf32>
    %125 = arith.addf %118, %119 : vector<16x32xf32>
    %cst_40 = arith.constant 8.99999984E-4 : f32
    %126 = vector.broadcast %cst_40 : f32 to vector<16x32xf32>
    %127 = arith.addf %125, %126 : vector<16x32xf32>
    %cst_41 = arith.constant 9.99999997E-7 : f32
    %128 = vector.broadcast %cst_41 : f32 to vector<16x32xf32>
    %129 = arith.addf %127, %128 : vector<16x32xf32>
    %cst_42 = arith.constant 2.000000e+00 : f32
    %130 = vector.broadcast %cst_42 : f32 to vector<16x32xf32>
    %131 = arith.mulf %130, %117 : vector<16x32xf32>
    %cst_43 = arith.constant 9.99999974E-5 : f32
    %132 = vector.broadcast %cst_43 : f32 to vector<16x32xf32>
    %133 = arith.addf %131, %132 : vector<16x32xf32>
    %134 = arith.mulf %133, %124 : vector<16x32xf32>
    %135 = arith.addf %115, %116 : vector<16x32xf32>
    %cst_44 = arith.constant 9.99999974E-5 : f32
    %136 = vector.broadcast %cst_44 : f32 to vector<16x32xf32>
    %137 = arith.addf %135, %136 : vector<16x32xf32>
    %138 = arith.mulf %137, %129 : vector<16x32xf32>
    %139 = tpu.reciprocal %138 {approx = true} : vector<16x32xf32> -> vector<16x32xf32>
    %140 = arith.mulf %138, %139 : vector<16x32xf32>
    %cst_45 = arith.constant 2.000000e+00 : f32
    %141 = vector.broadcast %cst_45 : f32 to vector<16x32xf32>
    %142 = arith.subf %141, %140 : vector<16x32xf32>
    %143 = arith.mulf %139, %142 : vector<16x32xf32>
    %144 = arith.mulf %134, %143 : vector<16x32xf32>
    %145 = vector.shape_cast %144 : vector<16x32xf32> to vector<1x16x32xf32>
    %cst_46 = arith.constant dense<0.000000e+00> : vector<1xf32>
    %146 = vector.multi_reduction <add>, %145, %cst_46 [1, 2] : vector<1x16x32xf32> to vector<1xf32>
    %147 = vector.shape_cast %146 : vector<1xf32> to vector<1x1x1xf32>
    %148 = vector.extract %147[0, 0, 0] : f32 from vector<1x1x1xf32>
    %149 = vector.broadcast %148 : f32 to vector<1x8x128xf32>
    %c0_47 = arith.constant 0 : index
    %c0_48 = arith.constant 0 : index
    %c0_49 = arith.constant 0 : index
    %150 = vector.load %arg5[%c0_47, %c0_48, %c0_49] : memref<1x8x128xf32, #tpu.memory_space<vmem>>, vector<1x8x128xf32>
    tpu.vector_store %arg5[%c0_47, %c0_48, %c0_49], %149 {strides = array<i32>} : memref<1x8x128xf32, #tpu.memory_space<vmem>>, vector<1x8x128xf32>,
    return
  }
  func.func @transform_0(%arg0: i32) -> (i32, i32, i32) {
    %c0_i32 = arith.constant 0 : i32
    %c0_i32_0 = arith.constant 0 : i32
    %c0_i32_1 = arith.constant 0 : i32
    return %arg0, %c0_i32, %c0_i32_0 : i32, i32, i32
  }
  func.func @transform_1(%arg0: i32) -> (i32, i32, i32) {
    %c0_i32 = arith.constant 0 : i32
    %c0_i32_0 = arith.constant 0 : i32
    %c0_i32_1 = arith.constant 0 : i32
    return %arg0, %c0_i32, %c0_i32_0 : i32, i32, i32
  }
  func.func @transform_2(%arg0: i32) -> (i32, i32) {
    %c0_i32 = arith.constant 0 : i32
    %c0_i32_0 = arith.constant 0 : i32
    %c0_i32_1 = arith.constant 0 : i32
    return %c0_i32, %c0_i32_0 : i32, i32
  }
  func.func @transform_3(%arg0: i32) -> (i32, i32) {
    %c0_i32 = arith.constant 0 : i32
    %c0_i32_0 = arith.constant 0 : i32
    %c0_i32_1 = arith.constant 0 : i32
    return %c0_i32, %c0_i32_0 : i32, i32
  }
  func.func @transform_4(%arg0: i32) -> (i32, i32, i32) {
    %c0_i32 = arith.constant 0 : i32
    %c0_i32_0 = arith.constant 0 : i32
    %c0_i32_1 = arith.constant 0 : i32
    return %arg0, %c0_i32, %c0_i32_0 : i32, i32, i32
  }
}

</mosaic_0001>

<bundles_post_ra>
// kernel: tpu_custom_call.1
= control target key start
LH: loop header
LB: loop body
LE: loop exit
PB: predicated region body
PF: predicated region fallthrough
CT: control target
= control target key end

     0   :  { %s3077_s0 = inlined_call_operand.hbm [shape: f32[8,16,16], index: 0, kind: input, shape index: {}]   ;;  %s3078_s1 = inlined_call_operand.hbm [shape: f32[8,16,16], index: 1, kind: input, shape index: {}]   ;;  %s3079_s2 = inlined_call_operand.hbm [shape: f32[16,16], index: 2, kind: input, shape index: {}]   ;;  %s3080_s3 = inlined_call_operand.hbm [shape: f32[32,32], index: 3, kind: input, shape index: {}]   ;;  %s3081_s4 = inlined_call_operand.hbm [shape: f32[4,8,128], index: 4, kind: output, shape index: {}]  }
   0x1   :  { %3089 = sst [smem:[#allocation16_spill]] %s3077_s0 }
   0x2   :  { %9 = vsyncpa [#allocation3], 0 }
   0x3   :  { %11 = vsyncpa [#allocation3 + $0x1], 0 }
   0x4   :  { %12 = vsyncpa [#allocation6], 0 }
   0x5   :  { %14 = vsyncpa [#allocation6 + $0x1], 0 }
   0x6   :  { %15 = vsyncpa [#allocation9], 0 }
   0x7   :  { %16 = vsyncpa [#allocation4], 0 }
   0x8   :  { %18 = vsyncpa [#allocation4 + $0x1], 0  ;;  %s2526_s15 = smov 0   ;;  %s2528_s16 = smov 0  }
   0x9   :  { %s2530_s17 = smov 0   ;;  %s2532_s18 = smov 0  }
   0xa LB: > { %s2547_s19 = sadd.s32 4294967295, %s2489_s18   ;;  %s1880_s20 = sadd.s32 4294967294, %s2489_s18   ;;  %s2489_s18 = sphi %s2532_s18, %s3109_s18   ;;  %s2485_s17 = sphi %s2530_s17, %s3108_s17   ;;  %s2481_s16 = sphi %s2528_s16, %s3107_s16   ;;  %s2477_s15 = sphi %s2526_s15, %s3106_s15  }
   0xb   : > { %p44_p0 = scmp.ne.s32.totalorder %s2481_s16, %s2477_s15  ;;  %p3086_p1 = scmp.eq.s32.totalorder %s2547_s19, 0 }
   0xc   : > { %p136_p2 = scmp.eq.s32.totalorder %s2547_s19, 3  ;;  %p142_p3 = scmp.eq.s32.totalorder %s1880_s20, 3 }
   0xd   : > { %p2556_p4 = por %p3086_p1, %p44_p0  ;;  %p1881_p5 = scmp.ge.s32.totalorder %s2489_s18, 1 }
   0xe   : > { %p2561_p6 = por %p142_p3, %p44_p0  ;;  %p149_p7 = scmp.lt.s32.totalorder %s2489_s18, 5 }
   0xf   : > { %s3090_s21 = scalar_select %p2556_p4, 1, 0 }
  0x10   : > { %s3091_s22 = scalar_select %p2561_p6, 1, 0 }
  0x11   : > { %p2566_p8 = pnand %p1881_p5, %p149_p7  ;;  %s2491_s24 = smov [#allocation7]  }
  0x12   : > { %s161_s25 = sshll.u32 %s2491_s24, 4  ;;  %s2492_s27 = smov [#allocation8]   ;;  %s162_s25 = int_to_ptr.vmem [resolvable:$true] %s161_s25 }
  0x13   : > { %p2238_p9 = pneg %p2566_p8  ;;  %s174_s28 = sshll.u32 %s2492_s27, 4  ;;  %s175_s28 = int_to_ptr.vmem [resolvable:$true] %s174_s28 }
  0x14   : > { %s2316_s29 = scalar_lea.vmem %s162_s25, 256  ;;  %p2324_p3 = scmp.lt.s32.totalorder %s162_s25, %s162_s25 }
  0x15   : > { %p2574_p10 = pnand %p2238_p9, %p3086_p1  ;;  %p2317_p12 = scmp.ne.s32.totalorder %s162_s25, %s2316_s29 }
  0x16   : > { %p2325_p5 = scmp.lt.s32.totalorder %s2316_s29, %s2316_s29 }
  0x17   : > { %p2307_p11 = pneg %p2574_p10 }
  0x18   : > { %p2326_p7 = por %p2325_p5, %p2324_p3 }
  0x19   : > { %p2319_p13 = pnand %p2317_p12, %p2307_p11 }
  0x1b   : > { %p2320_p0 = pneg %p2319_p13 }
  0x1d   : > { %p2327_p9 = pnand %p2326_p7, %p2320_p0 }
  0x1f   : > { %2330 = shalt.err (!%p2327_p9)
}
  0x20   : > { %s3082_s30 = smov 128   ;;  %s3084_s5 = smov 8  }
  0x21   : > { %2241 = dma.hbm_to_vmem [thread:$0]  (!%p2574_p10), %s3079_s2, 256, %s162_s25, [#allocation6], %s3082_s30, %s3082_s30, %s3084_s5  }
  0x22   : > { %s2342_s8 = scalar_lea.vmem %s175_s28, 512  ;;  %p2350_p0 = scmp.lt.s32.totalorder %s175_s28, %s175_s28 }
  0x23   : > { %p2343_p12 = scmp.ne.s32.totalorder %s175_s28, %s2342_s8  ;;  %p2351_p5 = scmp.lt.s32.totalorder %s2342_s8, %s2342_s8 }
  0x25   : > { %p2345_p13 = pnand %p2343_p12, %p2307_p11  ;;  %p2352_p7 = por %p2351_p5, %p2350_p0 }
  0x27   : > { %p2346_p3 = pneg %p2345_p13 }
  0x29   : > { %p2353_p9 = pnand %p2352_p7, %p2346_p3 }
  0x2b   : > { %2356 = shalt.err (!%p2353_p9)
}
  0x2c   : > { %2244 = dma.hbm_to_vmem [thread:$0]  (!%p2574_p10), %s3080_s3, 512, %s175_s28, [#allocation9], %s3082_s30, %s3082_s30, %s3084_s5  }
  0x2d   : > { %s2603_s11 = sadd.s32 1, %s2489_s18   ;;  %s31_s12 = sadd.s32 1, %s2485_s17 }
  0x2e   : > { %s28_s13 = ssub.s32 %s2489_s18, %s2603_s11  ;;  %p38_p11 = scmp.ne.s32.totalorder %s2485_s17, %s2481_s16 }
  0x2f   : > { %p29_p12 = scmp.eq.s32.totalorder %s28_s13, 0  ;;  %p39_p13 = scmp.eq.s32.totalorder %s2489_s18, 0 }
  0x30   : > { %p2613_p3 = por %p136_p2, %p38_p11  ;;  %p2258_p0 = scmp.lt.s32.totalorder %s2489_s18, 4 }
  0x31   : > { %s2619_s20 = scalar_select %p29_p12, %s2485_s17, %s31_s12  }
  0x32   : > { %s3094_s14 = scalar_select %p2613_p3, 1, 0 }
  0x33   : > { %p40_p5 = por %p39_p13, %p38_p11  ;;  %s188_s24 = sand.u32 1, %s2485_s17  }
  0x34   : > { %s1885_s25 = sshll.u32 %s188_s24, 5  ;;  %s1934_s26 = sshll.u32 %s2489_s18, 9 }
  0x35   : > { %s3095_s0 = sld [smem:[#allocation16_spill]]  ;;  %s192_s6 = scalar_lea.vmem [#allocation2], %s1885_s25 }
  0x36   : > { %s200_s7 = sshll.u32 %s192_s6, 4  ;;  %p2630_p2 = pnand %p2258_p0, %p40_p5  ;;  %s2628_s7 = int_to_ptr.vmem [resolvable:$true] %s200_s7 }
  0x37   : > { %s2637_s12 = scalar_lea.hbm %s3078_s1, %s1934_s26  ;;  %s214_s13 = scalar_lea.vmem [#allocation5], %s1885_s25 }
  0x38   : > { %s2639_s27 = sshll.u32 %s214_s13, 4  ;;  %s2641_s28 = scalar_lea.sflag [#allocation3], %s188_s24  ;;  %s2672_s27 = int_to_ptr.vmem [resolvable:$true] %s2639_s27 }
  0x39   : > { %p2359_p7 = pneg %p2630_p2 }
  0x3b   : > { %s2626_s29 = scalar_lea.hbm %s3095_s0, %s1934_s26  ;;  %s2362_s9 = scalar_lea.hbm %s3095_s0, 2048 }
  0x3c   : > { %s2357_s30 = scalar_lea.hbm %s2626_s29, 512  ;;  %p2363_p12 = scmp.lt.s32.totalorder %s2626_s29, %s3095_s0 }
  0x3d   : > { %p2358_p10 = scmp.ne.s32.totalorder %s2626_s29, %s2357_s30  ;;  %p2364_p13 = scmp.lt.s32.totalorder %s2362_s9, %s2357_s30 }
  0x3f   : > { %p2360_p9 = pnand %p2359_p7, %p2358_p10  ;;  %p2365_p0 = por %p2364_p13, %p2363_p12 }
  0x41   : > { %p2361_p11 = pneg %p2360_p9 }
  0x43   : > { %p2366_p5 = pnand %p2365_p0, %p2361_p11 }
  0x45   : > { %2369 = shalt.err (!%p2366_p5)
}
  0x46   : > { %s2370_s24 = scalar_lea.vmem %s2628_s7, 512  ;;  %s2495_s5 = smov [#allocation2]  }
  0x47   : > { %p2371_p1 = scmp.ne.s32.totalorder %s2628_s7, %s2370_s24  ;;  %s2375_s25 = sshll.u32 %s2495_s5, 4  ;;  %s2376_s25 = int_to_ptr.vmem [resolvable:$false] %s2375_s25 }
  0x48   : > { %s2377_s13 = scalar_lea.vmem %s2376_s25, 1024  ;;  %p2378_p6 = scmp.lt.s32.totalorder %s2628_s7, %s2376_s25 }
  0x49   : > { %p2373_p10 = pnand %p2371_p1, %p2359_p7  ;;  %p2379_p3 = scmp.lt.s32.totalorder %s2377_s13, %s2370_s24 }
  0x4b   : > { %p2374_p9 = pneg %p2373_p10  ;;  %p2380_p4 = por %p2379_p3, %p2378_p6 }
  0x4d   : > { %p2381_p12 = pnand %p2380_p4, %p2374_p9 }
  0x4f   : > { %2384 = shalt.err (!%p2381_p12)
}
  0x50   : > { %s3097_s30 = smov 8   ;;  %s3098_s6 = smov 128  }
  0x51   : > { %2248 = dma.hbm_to_vmem [thread:$0]  (!%p2630_p2), %s2626_s29, 512, %s2628_s7, %s2641_s28, %s3098_s6, %s3098_s6, %s3097_s30  }
  0x52   : > { %s210_s9 = sand.u32 1, %s2489_s18   ;;  %s2385_s26 = scalar_lea.hbm %s2637_s12, 512 }
  0x53   : > { %s211_s10 = scalar_lea.sflag [#allocation6], %s210_s9  ;;  %p2386_p1 = scmp.ne.s32.totalorder %s2637_s12, %s2385_s26 }
  0x54   : > { %s2390_s25 = scalar_lea.hbm %s3078_s1, 2048  ;;  %p2391_p3 = scmp.lt.s32.totalorder %s2637_s12, %s3078_s1 }
  0x55   : > { %p2388_p4 = pnand %p2386_p1, %p2359_p7  ;;  %p2392_p11 = scmp.lt.s32.totalorder %s2390_s25, %s2385_s26 }
  0x57   : > { %p2389_p6 = pneg %p2388_p4  ;;  %p2393_p13 = por %p2392_p11, %p2391_p3 }
  0x59   : > { %p2394_p0 = pnand %p2393_p13, %p2389_p6 }
  0x5b   : > { %2397 = shalt.err (!%p2394_p0)
}
  0x5c   : > { %s2398_s29 = scalar_lea.vmem %s2672_s27, 512  ;;  %s2496_s7 = smov [#allocation5]  }
  0x5d   : > { %p2399_p5 = scmp.ne.s32.totalorder %s2672_s27, %s2398_s29  ;;  %s2403_s28 = sshll.u32 %s2496_s7, 4  ;;  %s2404_s28 = int_to_ptr.vmem [resolvable:$false] %s2403_s28 }
  0x5e   : > { %s2405_s9 = scalar_lea.vmem %s2404_s28, 1024  ;;  %p2406_p12 = scmp.lt.s32.totalorder %s2672_s27, %s2404_s28 }
  0x5f   : > { %p2401_p10 = pnand %p2399_p5, %p2359_p7  ;;  %p2407_p1 = scmp.lt.s32.totalorder %s2405_s9, %s2398_s29 }
  0x61   : > { %p2402_p9 = pneg %p2401_p10  ;;  %p2408_p4 = por %p2407_p1, %p2406_p12 }
  0x63   : > { %p2409_p3 = pnand %p2408_p4, %p2402_p9 }
  0x65   : > { %2412 = shalt.err (!%p2409_p3)
}
  0x66   : > { %2251 = dma.hbm_to_vmem [thread:$0]  (!%p2630_p2), %s2637_s12, 512, %s2672_s27, %s211_s10, %s3098_s6, %s3098_s6, %s3097_s30  }
  0x67   : > { %234 = sbr.rel (%p2566_p8) target bundleno = 1796 (0x704), region = 36  ;;  %s2703_s0 = sand.u32 (!%p2566_p8), 1, %s2481_s16  }
  0x68   : > { %s1894_s26 = sshll.u32 (!%p2566_p8), %s2703_s0, 5  ;;  %s237_s24 = scalar_lea.sflag (!%p2566_p8), [#allocation3], %s2703_s0 }
  0x69   : > { %s2707_s5 = scalar_lea.vmem (!%p2566_p8), [#allocation2], %s1894_s26  ;;  %p3099_p7 = scmp.ne.s32.totalorder (!%p2566_p8), %s3090_s21, 0 }
  0x6c   : > { %2456 = dma.done.wait (%p3099_p7), %s237_s24, 512  }
  0x6d   : > { %2458 = vsyncadd (%p3099_p7), %s237_s24, 4294966784  ;;  %s245_s8 = sand.u32 1, %s2547_s19   ;;  %s2714_s12 = scalar_lea.vmem [#allocation5], %s1894_s26 }
  0x6e   : > { %s246_s23 = scalar_lea.sflag [#allocation6], %s245_s8 }
  0x6f   : > { %2460 = dma.done.wait (%p3099_p7), %s246_s23, 512  }
  0x70   : > { %2462 = vsyncadd (%p3099_p7), %s246_s23, 4294966784  ;;  %p3100_p8 = scmp.eq.s32.totalorder %s2547_s19, 0 }
  0x72   : > { %2464 = dma.done.wait (%p3100_p8), [#allocation6], 256   ;;  %p3101_p2 = pmov %p3100_p8 }
  0x74   : > { %2466 = vsyncadd (%p3101_p2), [#allocation6], 4294967040  ;;  %p3102_p6 = pmov %p3101_p2 }
  0x75   : > { %p3103_p11 = pmov %p3101_p2 }
  0x76   : > { %2468 = dma.done.wait (%p3102_p6), [#allocation9], 512  }
  0x77   : > { %2470 = vsyncadd (%p3103_p11), [#allocation9], 4294966784  ;;  %v2497_v0 = vmov 0.0   ;;  %vm2498_vm0 = vmmov 0   ;;  %v320_v1 = vld [vmem:[%s2714_s12 + $0x10] sm:$0xff]  ;;  %s2499_s21 = smov 16  }
  0x78   : > { %2012 = vmatprep.subr.bf16.mxu0 %v2497_v0  ;;  %2018 = vmatprep.subr.bf16.mxu1 %v2497_v0  ;;  %v316_v2 = vld [vmem:[%s2707_s5 + $0x10] sm:$0xff]  ;;  %v321_v3 = vld [vmem:[%s2714_s12 + $0x18] sm:$0xff]  ;;  %v290_v5 = vld [vmem:[#allocation7] sm:$0xff]  ;;  %vm330_vm1 = vcmask 130048   ;;  %vm486_vm2 = vcmask 261120   ;;  %s1898_s27 = sshll.u32 %s2703_s0, 3 }
  0x79   : > { %2014 = vmatprep.mubr.msk.bf16.mxu0 %vm2498_vm0, %v2497_v0  ;;  %2020 = vmatprep.mubr.msk.bf16.mxu1 %vm2498_vm0, %v2497_v0  ;;  %v317_v4 = vld [vmem:[%s2707_s5 + $0x18] sm:$0xff]  ;;  %v291_v6 = vld [vmem:[#allocation7 + $0x8] sm:$0xff]  ;;  %v314_v12 = vld [vmem:[%s2707_s5] sm:$0xff]  ;;  %s286_s30 = scalar_lea.vmem [#allocation10], %s1898_s27  ;;  %s1930_s10 = sshll.u32 %s2547_s19, 7 }
  0x7a   : > { %335 = vrot.lane.b32.xlu1 %v320_v1, %s2499_s21  ;;  %324 = vrot.lane.b32.xlu0 %v316_v2, %s2499_s21  ;;  %v2738_v7 = vpack.c.bf16 %v291_v6, %v290_v5  ;;  %v318_v13 = vld [vmem:[%s2714_s12] sm:$0xff]  ;;  %v319_v14 = vld [vmem:[%s2714_s12 + $0x8] sm:$0xff]  ;;  %v298_v50 = vld [vmem:[#allocation8] sm:$0xff]  ;;  %s1768_s6 = sshll.u32 %s286_s30, 4  ;;  %s1766_s7 = scalar_lea.hbm %s3081_s4, %s1930_s10  ;;  %s3038_s6 = int_to_ptr.vmem [resolvable:$true] %s1768_s6 }
  0x7b   : > { %v315_v15 = vld [vmem:[%s2707_s5 + $0x8] sm:$0xff]  ;;  %v300_v47 = vld [vmem:[#allocation8 + $0x10] sm:$0xff]  ;;  %v299_v51 = vld [vmem:[#allocation8 + $0x8] sm:$0xff]  ;;  %s1755_s28 = scalar_lea.sflag [#allocation4], %s2703_s0  ;;  %s2413_s9 = scalar_lea.vmem %s3038_s6, 128 }
  0x7c   : > { %v293_v8 = vunpack.c.l.bf16 %v2738_v7  ;;  %v294_v9 = vunpack.c.h.bf16 %v2738_v7  ;;  %v301_v48 = vld [vmem:[#allocation8 + $0x18] sm:$0xff]  ;;  %v2799_v52 = vpack.c.bf16 %v299_v51, %v298_v50  ;;  %p2414_p13 = scmp.ne.s32.totalorder %s3038_s6, %s2413_s9  ;;  %p3104_p0 = scmp.ne.s32.totalorder %s3094_s14, 0 }
  0x7d   : > { %v2793_v49 = vpack.c.bf16 %v301_v48, %v300_v47  ;;  %s2500_s26 = smov [#allocation10]  }
  0x7e   : > { %337 = vrot.lane.b32.xlu1 %v321_v3, %s2499_s21  ;;  %326 = vrot.lane.b32.xlu0 %v317_v4, %s2499_s21  ;;  %v295_v17 = vsub.f32 %v290_v5, %v293_v8  ;;  %v296_v18 = vsub.f32 %v291_v6, %v294_v9  ;;  %v304_v58 = vunpack.c.l.bf16 %v2799_v52  ;;  %v305_v59 = vunpack.c.h.bf16 %v2799_v52  ;;  %p2415_p5 = pnand %p2414_p13, %p3104_p0  ;;  %s2417_s19 = sshll.u32 %s2500_s26, 4  ;;  %s2418_s19 = int_to_ptr.vmem [resolvable:$false] %s2417_s19 }
  0x7f   : > { %v306_v53 = vunpack.c.l.bf16 %v2793_v49  ;;  %v307_v54 = vunpack.c.h.bf16 %v2793_v49  ;;  %s2419_s24 = scalar_lea.vmem %s2418_s19, 256  ;;  %p2420_p9 = scmp.lt.s32.totalorder %s3038_s6, %s2418_s19 }
  0x80   : > { %v2756_v29 = vpack.c.bf16 %v296_v18, %v295_v17  ;;  %v308_v60 = vsub.f32 %v298_v50, %v304_v58  ;;  %v309_v61 = vsub.f32 %v299_v51, %v305_v59  ;;  %p2416_p10 = pneg %p2415_p5  ;;  %p2421_p12 = scmp.lt.s32.totalorder %s2419_s24, %s2413_s9 }
  0x81   : > { %v310_v55 = vsub.f32 %v300_v47, %v306_v53  ;;  %v311_v56 = vsub.f32 %v301_v48, %v307_v54 }
  0x82   : > { %v2811_v62 = vpack.c.bf16 %v309_v61, %v308_v60  ;;  %p2422_p1 = por %p2421_p12, %p2420_p9 }
  0x83   : > { %v2807_v57 = vpack.c.bf16 %v311_v56, %v310_v55 }
  0x84   : > { %p2423_p4 = pnand %p2422_p1, %p2416_p10 }
  0xec   : > { %v336_v10 = vpop.permute.xlu1 %335  ;;  %v325_v11 = vpop.permute.xlu0 %324 }
  0xed   : > { %v331_v16 = vsel %vm330_vm1, %v314_v12, %v325_v11  ;;  %v2748_v19 = vsel %vm330_vm1, %v318_v13, %v336_v10 }
  0xee   : > { %v886_v24 = vmul.f32 %v331_v16, %v331_v16  ;;  %v1426_v27 = vmul.f32 %v2748_v19, %v331_v16 }
  0xf0   : > { %v338_v20 = vpop.permute.xlu1 %337  ;;  %v327_v21 = vpop.permute.xlu0 %326 }
  0xf1   : > { %v2751_v22 = vsel %vm330_vm1, %v319_v14, %v338_v20  ;;  %v332_v23 = vsel %vm330_vm1, %v315_v15, %v327_v21 }
  0xf2   : > { %v343_v25 = vpack.c.bf16 %v332_v23, %v331_v16  ;;  %v887_v26 = vmul.f32 %v332_v23, %v332_v23  ;;  %v1427_v28 = vmul.f32 %v2751_v22, %v332_v23  ;;  %v618_v10 = vpack.c.bf16 %v2751_v22, %v2748_v19 }
  0xf4   : > { %v345_v30 = vunpack.c.h.bf16 %v343_v25  ;;  %2013 = vmatpush3.bf16.msra.mxu0 %v343_v25  ;;  %2019 = vmatpush3.bf16.msra.mxu1 %v343_v25  ;;  %v344_v31 = vunpack.c.l.bf16 %v343_v25  ;;  %v2758_v32 = vpack.c.bf16 %v887_v26, %v886_v24  ;;  %v2762_v33 = vpack.c.bf16 %v1427_v28, %v1426_v27 }
  0xf5   : > { %2024 = vmatprep.subr.bf16.mxu0 %v2497_v0  ;;  %2030 = vmatprep.subr.bf16.mxu1 %v2497_v0  ;;  %v620_v17 = vunpack.c.h.bf16 %v618_v10  ;;  %v619_v20 = vunpack.c.l.bf16 %v618_v10 }
  0xf6   : > { %v347_v34 = vsub.f32 %v332_v23, %v345_v30  ;;  %v346_v35 = vsub.f32 %v331_v16, %v344_v31  ;;  %v889_v36 = vunpack.c.l.bf16 %v2758_v32  ;;  %v890_v37 = vunpack.c.h.bf16 %v2758_v32 }
  0xf7   : > { %2015 = vmatmul.mubr.msk.bf16.vlgmr.msra.gmra.mxu0 %vm330_vm1, %v2756_v29  ;;  %2021 = vmatmul.mubr.msk.bf16.vlgmr.msra.gmra.mxu1 %vm330_vm1, %v2738_v7  ;;  %v1429_v38 = vunpack.c.l.bf16 %v2762_v33  ;;  %v1430_v39 = vunpack.c.h.bf16 %v2762_v33  ;;  %v622_v25 = vsub.f32 %v2751_v22, %v620_v17 }
  0xf8   : > { %v348_v40 = vpack.c.bf16 %v347_v34, %v346_v35  ;;  %2026 = vmatprep.mubr.msk.bf16.mxu0 %vm2498_vm0, %v2497_v0  ;;  %2034 = vmatprep.mubr.msk.bf16.mxu1 %vm2498_vm0, %v2497_v0  ;;  %v2776_v41 = vsub.f32 %v886_v24, %v889_v36  ;;  %v2778_v42 = vsub.f32 %v887_v26, %v890_v37 }
  0xf9   : > { %v2780_v43 = vsub.f32 %v1426_v27, %v1429_v38  ;;  %v2782_v44 = vsub.f32 %v1427_v28, %v1430_v39  ;;  %2031 = vmatpush3.bf16.msra.mxu1 %v2793_v49  ;;  %v621_v26 = vsub.f32 %v2748_v19, %v619_v20 }
  0xfa   : > { %2025 = vmatpush3.bf16.msra.mxu0 %v348_v40  ;;  %v893_v45 = vpack.c.bf16 %v2778_v42, %v2776_v41  ;;  %2032 = vmatprep.subr.bf16.mxu1 %v2497_v0 }
  0xfb   : > { %2038 = vmatprep.subr.bf16.mxu0 %v2497_v0  ;;  %v1433_v46 = vpack.c.bf16 %v2782_v44, %v2780_v43  ;;  %v623_v31 = vpack.c.bf16 %v622_v25, %v621_v26 }
  0xfd   : > { %2033 = vmatpush3.bf16.msra.mxu1 %v2799_v52 }
  0xfe   : > { %2046 = vmatprep.subr.bf16.mxu1 %v2497_v0 }
  0xff   : > { %2027 = vmatmul.mubr.msk.bf16.vlgmr.msra.gmra.mxu0 %vm330_vm1, %v2738_v7 }
 0x100   : > { %2042 = vmatprep.mubr.msk.bf16.mxu0 %vm2498_vm0, %v2497_v0  ;;  %2039 = vmatpush3.bf16.msra.mxu0 %v2793_v49 }
 0x101   : > { %2040 = vmatprep.subr.bf16.mxu0 %v2497_v0 }
 0x104   : > { %2041 = vmatpush3.bf16.msra.mxu0 %v2799_v52 }
 0x105   : > { %2054 = vmatprep.subr.bf16.mxu0 %v2497_v0 }
 0x1b7   : > { %v386_v63 = vpop.f32.mrf.mxu0  ;;  %v430_v1 = vpop.f32.mrf.mxu1 }
 0x1b8   : > { %v431_v12 = vadd.f32 %v430_v1, %v386_v63 }
 0x1b9   : > { %v2016_v2 = vpop.f32.mrf.mxu0  ;;  %v2022_v3 = vpop.f32.mrf.mxu1 }
 0x1bb   : > { %v389_v4 = vpop.f32.mrf.mxu0  ;;  %v433_v5 = vpop.f32.mrf.mxu1 }
 0x1bc   : > { %v434_v13 = vadd.f32 %v433_v5, %v389_v4 }
 0x1bd   : > { %v2017_v6 = vpop.f32.mrf.mxu0  ;;  %v2023_v8 = vpop.f32.mrf.mxu1 }
 0x1bf   : > { %v471_v9 = vpop.f32.mrf.mxu0 }
 0x1c0   : > { %v478_v15 = vadd.f32 %v471_v9, %v431_v12 }
 0x1c1   : > { %v2028_v11 = vpop.f32.mrf.mxu0 }
 0x1c3   : > { %v474_v14 = vpop.f32.mrf.mxu0 }
 0x1c4   : > { %v479_v16 = vadd.f32 %v474_v14, %v434_v13 }
 0x1c5   : > { %v2029_v18 = vpop.f32.mrf.mxu0 }
 0x1c6   : > { %v480_v21 = vpack.c.bf16 %v479_v16, %v478_v15 }
 0x1c8   : > { %v481_v23 = vunpack.c.l.bf16 %v480_v21  ;;  %v482_v24 = vunpack.c.h.bf16 %v480_v21  ;;  %2043 = vmatmul.mubr.msk.bf16.vlgmr.msra.gmra.mxu0 %vm486_vm2, %v480_v21 }
 0x1c9   : > { %2055 = vmatpush3.bf16.msra.mxu0 %v618_v10  ;;  %2056 = vmatprep.mubr.msk.bf16.mxu0 %vm2498_vm0, %v2497_v0 }
 0x1ca   : > { %v483_v27 = vsub.f32 %v478_v15, %v481_v23  ;;  %v484_v28 = vsub.f32 %v479_v16, %v482_v24  ;;  %2066 = vmatprep.subr.bf16.mxu0 %v2497_v0 }
 0x1cc   : > { %v485_v30 = vpack.c.bf16 %v484_v28, %v483_v27 }
 0x1ce   : > { %2035 = vmatmul.mubr.msk.bf16.vlgmr.msra.gmra.mxu1 %vm486_vm2, %v485_v30 }
 0x1cf   : > { %2047 = vmatpush3.bf16.msra.mxu1 %v2807_v57  ;;  %2050 = vmatprep.mubr.msk.bf16.mxu1 %vm2498_vm0, %v2497_v0 }
 0x1d0   : > { %2048 = vmatprep.subr.bf16.mxu1 %v2497_v0  ;;  %2057 = vmatmul.mubr.msk.bf16.vlgmr.msra.gmra.mxu0 %vm330_vm1, %v2756_v29 }
 0x1d1   : > { %2067 = vmatpush3.bf16.msra.mxu0 %v623_v31  ;;  %2068 = vmatprep.mubr.msk.bf16.mxu0 %vm2498_vm0, %v2497_v0 }
 0x1d2   : > { %2080 = vmatprep.subr.bf16.mxu0 %v2497_v0 }
 0x1d3   : > { %2049 = vmatpush3.bf16.msra.mxu1 %v2811_v62 }
 0x1d4   : > { %2060 = vmatprep.subr.bf16.mxu1 %v2497_v0 }
 0x1d6   : > { %2051 = vmatmul.mubr.msk.bf16.vlgmr.msra.gmra.mxu1 %vm486_vm2, %v480_v21 }
 0x1d7   : > { %2061 = vmatpush3.bf16.msra.mxu1 %v618_v10  ;;  %2062 = vmatprep.mubr.msk.bf16.mxu1 %vm2498_vm0, %v2497_v0 }
 0x1d8   : > { %2069 = vmatmul.mubr.msk.bf16.vlgmr.msra.gmra.mxu0 %vm330_vm1, %v2738_v7  ;;  %2072 = vmatprep.subr.bf16.mxu1 %v2497_v0 }
 0x1d9   : > { %2081 = vmatpush3.bf16.msra.mxu0 %v2793_v49  ;;  %2084 = vmatprep.mubr.msk.bf16.mxu0 %vm2498_vm0, %v2497_v0 }
 0x1da   : > { %2082 = vmatprep.subr.bf16.mxu0 %v2497_v0 }
 0x1dd   : > { %2083 = vmatpush3.bf16.msra.mxu0 %v2799_v52 }
 0x1de   : > { %2063 = vmatmul.mubr.msk.bf16.vlgmr.msra.gmra.mxu1 %vm330_vm1, %v2738_v7  ;;  %2096 = vmatprep.subr.bf16.mxu0 %v2497_v0 }
 0x1df   : > { %2073 = vmatpush3.bf16.msra.mxu1 %v2793_v49  ;;  %2076 = vmatprep.mubr.msk.bf16.mxu1 %vm2498_vm0, %v2497_v0 }
 0x1e0   : > { %2074 = vmatprep.subr.bf16.mxu1 %v2497_v0 }
 0x1e3   : > { %2075 = vmatpush3.bf16.msra.mxu1 %v2799_v52 }
 0x1e4   : > { %2088 = vmatprep.subr.bf16.mxu1 %v2497_v0 }
 0x288   : > { %v568_v34 = vpop.f32.mrf.mxu0 }
 0x28a   : > { %v2044_v35 = vpop.f32.mrf.mxu0 }
 0x28c   : > { %v571_v36 = vpop.f32.mrf.mxu0 }
 0x28e   : > { %v524_v37 = vpop.f32.mrf.mxu1  ;;  %v2045_v38 = vpop.f32.mrf.mxu0 }
 0x28f   : > { %v569_v39 = vadd.f32 %v568_v34, %v524_v37 }
 0x290   : > { %v2036_v40 = vpop.f32.mrf.mxu1  ;;  %v658_v47 = vpop.f32.mrf.mxu0 }
 0x292   : > { %v527_v48 = vpop.f32.mrf.mxu1  ;;  %v2058_v50 = vpop.f32.mrf.mxu0 }
 0x293   : > { %v572_v51 = vadd.f32 %v571_v36, %v527_v48 }
 0x294   : > { %v2037_v53 = vpop.f32.mrf.mxu1  ;;  %v661_v54 = vpop.f32.mrf.mxu0 }
 0x296   : > { %v609_v55 = vpop.f32.mrf.mxu1  ;;  %v2059_v56 = vpop.f32.mrf.mxu0 }
 0x297   : > { %v2853_v58 = vadd.f32 %v609_v55, %v569_v39 }
 0x298   : > { %v2052_v59 = vpop.f32.mrf.mxu1  ;;  %v740_v60 = vpop.f32.mrf.mxu0 }
 0x299   : > { %v2900_v39 = vmul.f32 %v2853_v58, %v2853_v58 }
 0x29a   : > { %v612_v61 = vpop.f32.mrf.mxu1  ;;  %v2070_v63 = vpop.f32.mrf.mxu0 }
 0x29b   : > { %v2855_v1 = vadd.f32 %v612_v61, %v572_v51 }
 0x29c   : > { %v2053_v2 = vpop.f32.mrf.mxu1  ;;  %v743_v3 = vpop.f32.mrf.mxu0 }
 0x29d   : > { %v2913_v56 = vmul.f32 %v2855_v1, %v2855_v1  ;;  %v1156_v2 = vmul.f32 %v2748_v19, %v2748_v19 }
 0x29e   : > { %v699_v4 = vpop.f32.mrf.mxu1  ;;  %v2071_v5 = vpop.f32.mrf.mxu0 }
 0x29f   : > { %v700_v8 = vadd.f32 %v699_v4, %v658_v47 }
 0x2a0   : > { %v2064_v6 = vpop.f32.mrf.mxu1 }
 0x2a1   : > { %v747_v12 = vadd.f32 %v740_v60, %v700_v8 }
 0x2a2   : > { %v702_v9 = vpop.f32.mrf.mxu1 }
 0x2a3   : > { %v703_v10 = vadd.f32 %v702_v9, %v661_v54 }
 0x2a4   : > { %v2065_v11 = vpop.f32.mrf.mxu1 }
 0x2a5   : > { %v748_v13 = vadd.f32 %v743_v3, %v703_v10  ;;  %v1157_v3 = vmul.f32 %v2751_v22, %v2751_v22 }
 0x2a7   : > { %v749_v14 = vpack.c.bf16 %v748_v13, %v747_v12  ;;  %v1158_v10 = vpack.c.bf16 %v1157_v3, %v1156_v2 }
 0x2a9   : > { %v750_v15 = vunpack.c.l.bf16 %v749_v14  ;;  %v751_v16 = vunpack.c.h.bf16 %v749_v14  ;;  %2085 = vmatmul.mubr.msk.bf16.vlgmr.msra.gmra.mxu0 %vm486_vm2, %v749_v14 }
 0x2aa   : > { %2097 = vmatpush3.bf16.msra.mxu0 %v2758_v32  ;;  %2098 = vmatprep.mubr.msk.bf16.mxu0 %vm2498_vm0, %v2497_v0 }
 0x2ab   : > { %v752_v17 = vsub.f32 %v747_v12, %v750_v15  ;;  %v753_v18 = vsub.f32 %v748_v13, %v751_v16  ;;  %2108 = vmatprep.subr.bf16.mxu0 %v2497_v0  ;;  %v1159_v13 = vunpack.c.l.bf16 %v1158_v10 }
 0x2ad   : > { %v754_v20 = vpack.c.bf16 %v753_v18, %v752_v17  ;;  %v1161_v17 = vsub.f32 %v1156_v2, %v1159_v13 }
 0x2af   : > { %2077 = vmatmul.mubr.msk.bf16.vlgmr.msra.gmra.mxu1 %vm486_vm2, %v754_v20 }
 0x2b0   : > { %2089 = vmatpush3.bf16.msra.mxu1 %v2807_v57  ;;  %2092 = vmatprep.mubr.msk.bf16.mxu1 %vm2498_vm0, %v2497_v0 }
 0x2b1   : > { %2099 = vmatmul.mubr.msk.bf16.vlgmr.msra.gmra.mxu0 %vm330_vm1, %v2756_v29  ;;  %2090 = vmatprep.subr.bf16.mxu1 %v2497_v0 }
 0x2b2   : > { %2109 = vmatpush3.bf16.msra.mxu0 %v893_v45  ;;  %2110 = vmatprep.mubr.msk.bf16.mxu0 %vm2498_vm0, %v2497_v0 }
 0x2b3   : > { %2122 = vmatprep.subr.bf16.mxu0 %v2497_v0 }
 0x2b4   : > { %2091 = vmatpush3.bf16.msra.mxu1 %v2811_v62 }
 0x2b5   : > { %2102 = vmatprep.subr.bf16.mxu1 %v2497_v0 }
 0x2b7   : > { %2093 = vmatmul.mubr.msk.bf16.vlgmr.msra.gmra.mxu1 %vm486_vm2, %v749_v14  ;;  %v1160_v14 = vunpack.c.h.bf16 %v1158_v10 }
 0x2b8   : > { %2103 = vmatpush3.bf16.msra.mxu1 %v2758_v32  ;;  %2104 = vmatprep.mubr.msk.bf16.mxu1 %vm2498_vm0, %v2497_v0 }
 0x2b9   : > { %2111 = vmatmul.mubr.msk.bf16.vlgmr.msra.gmra.mxu0 %vm330_vm1, %v2738_v7  ;;  %2114 = vmatprep.subr.bf16.mxu1 %v2497_v0  ;;  %v1162_v18 = vsub.f32 %v1157_v3, %v1160_v14 }
 0x2ba   : > { %2123 = vmatpush3.bf16.msra.mxu0 %v2793_v49  ;;  %2126 = vmatprep.mubr.msk.bf16.mxu0 %vm2498_vm0, %v2497_v0 }
 0x2bb   : > { %2124 = vmatprep.subr.bf16.mxu0 %v2497_v0 }
 0x2be   : > { %2125 = vmatpush3.bf16.msra.mxu0 %v2799_v52 }
 0x2bf   : > { %2105 = vmatmul.mubr.msk.bf16.vlgmr.msra.gmra.mxu1 %vm330_vm1, %v2738_v7  ;;  %2138 = vmatprep.subr.bf16.mxu0 %v2497_v0 }
 0x2c0   : > { %2115 = vmatpush3.bf16.msra.mxu1 %v2793_v49  ;;  %2118 = vmatprep.mubr.msk.bf16.mxu1 %vm2498_vm0, %v2497_v0 }
 0x2c1   : > { %2116 = vmatprep.subr.bf16.mxu1 %v2497_v0 }
 0x2c4   : > { %2117 = vmatpush3.bf16.msra.mxu1 %v2799_v52 }
 0x2c5   : > { %2130 = vmatprep.subr.bf16.mxu1 %v2497_v0 }
 0x369   : > { %v836_v32 = vpop.f32.mrf.mxu0 }
 0x36b   : > { %v2086_v41 = vpop.f32.mrf.mxu0 }
 0x36d   : > { %v839_v42 = vpop.f32.mrf.mxu0 }
 0x36f   : > { %v792_v45 = vpop.f32.mrf.mxu1  ;;  %v2087_v21 = vpop.f32.mrf.mxu0 }
 0x370   : > { %v837_v23 = vadd.f32 %v836_v32, %v792_v45  ;;  %v1163_v32 = vpack.c.bf16 %v1162_v18, %v1161_v17 }
 0x371   : > { %v2078_v24 = vpop.f32.mrf.mxu1  ;;  %v928_v25 = vpop.f32.mrf.mxu0 }
 0x373   : > { %v795_v26 = vpop.f32.mrf.mxu1  ;;  %v2100_v27 = vpop.f32.mrf.mxu0 }
 0x374   : > { %v840_v28 = vadd.f32 %v839_v42, %v795_v26 }
 0x375   : > { %v2079_v30 = vpop.f32.mrf.mxu1  ;;  %v931_v31 = vpop.f32.mrf.mxu0 }
 0x377   : > { %v877_v34 = vpop.f32.mrf.mxu1  ;;  %v2101_v35 = vpop.f32.mrf.mxu0 }
 0x378   : > { %v884_v36 = vadd.f32 %v877_v34, %v837_v23 }
 0x379   : > { %v2094_v37 = vpop.f32.mrf.mxu1  ;;  %v1010_v38 = vpop.f32.mrf.mxu0 }
 0x37a   : > { %v2902_v40 = vmul.f32 %v884_v36, %v884_v36  ;;  %v2905_v47 = vmul.f32 %v884_v36, %v2853_v58 }
 0x37b   : > { %v880_v48 = vpop.f32.mrf.mxu1  ;;  %v2112_v50 = vpop.f32.mrf.mxu0 }
 0x37c   : > { %v2909_v51 = vadd.f32 %v2902_v40, %v2900_v39  ;;  %v885_v53 = vadd.f32 %v880_v48, %v840_v28 }
 0x37d   : > { %v2095_v54 = vpop.f32.mrf.mxu1  ;;  %v1013_v55 = vpop.f32.mrf.mxu0 }
 0x37e   : > { %v2915_v59 = vmul.f32 %v885_v53, %v885_v53  ;;  %v2918_v60 = vmul.f32 %v885_v53, %v2855_v1 }
 0x37f   : > { %v969_v58 = vpop.f32.mrf.mxu1  ;;  %v2113_v61 = vpop.f32.mrf.mxu0 }
 0x380   : > { %v2922_v63 = vadd.f32 %v2915_v59, %v2913_v56  ;;  %v970_v5 = vadd.f32 %v969_v58, %v928_v25 }
 0x381   : > { %v2106_v4 = vpop.f32.mrf.mxu1 }
 0x382   : > { %v1017_v1 = vadd.f32 %v1010_v38, %v970_v5 }
 0x383   : > { %v972_v6 = vpop.f32.mrf.mxu1 }
 0x384   : > { %v973_v8 = vadd.f32 %v972_v6, %v931_v31 }
 0x385   : > { %v2107_v9 = vpop.f32.mrf.mxu1 }
 0x386   : > { %v1018_v11 = vadd.f32 %v1013_v55, %v973_v8 }
 0x388   : > { %v1019_v12 = vpack.c.bf16 %v1018_v11, %v1017_v1 }
 0x38a   : > { %v1020_v15 = vunpack.c.l.bf16 %v1019_v12  ;;  %v1021_v16 = vunpack.c.h.bf16 %v1019_v12  ;;  %2127 = vmatmul.mubr.msk.bf16.vlgmr.msra.gmra.mxu0 %vm486_vm2, %v1019_v12 }
 0x38b   : > { %2139 = vmatpush3.bf16.msra.mxu0 %v1158_v10  ;;  %2140 = vmatprep.mubr.msk.bf16.mxu0 %vm2498_vm0, %v2497_v0 }
 0x38c   : > { %v1022_v19 = vsub.f32 %v1017_v1, %v1020_v15  ;;  %v1023_v22 = vsub.f32 %v1018_v11, %v1021_v16  ;;  %2150 = vmatprep.subr.bf16.mxu0 %v2497_v0 }
 0x38e   : > { %v1024_v20 = vpack.c.bf16 %v1023_v22, %v1022_v19 }
 0x390   : > { %2119 = vmatmul.mubr.msk.bf16.vlgmr.msra.gmra.mxu1 %vm486_vm2, %v1024_v20 }
 0x391   : > { %2131 = vmatpush3.bf16.msra.mxu1 %v2807_v57  ;;  %2134 = vmatprep.mubr.msk.bf16.mxu1 %vm2498_vm0, %v2497_v0 }
 0x392   : > { %2141 = vmatmul.mubr.msk.bf16.vlgmr.msra.gmra.mxu0 %vm330_vm1, %v2756_v29  ;;  %2132 = vmatprep.subr.bf16.mxu1 %v2497_v0 }
 0x393   : > { %2151 = vmatpush3.bf16.msra.mxu0 %v1163_v32  ;;  %2152 = vmatprep.mubr.msk.bf16.mxu0 %vm2498_vm0, %v2497_v0 }
 0x394   : > { %2164 = vmatprep.subr.bf16.mxu0 %v2497_v0 }
 0x395   : > { %2133 = vmatpush3.bf16.msra.mxu1 %v2811_v62 }
 0x396   : > { %2144 = vmatprep.subr.bf16.mxu1 %v2497_v0 }
 0x398   : > { %2135 = vmatmul.mubr.msk.bf16.vlgmr.msra.gmra.mxu1 %vm486_vm2, %v1019_v12 }
 0x399   : > { %2145 = vmatpush3.bf16.msra.mxu1 %v1158_v10  ;;  %2146 = vmatprep.mubr.msk.bf16.mxu1 %vm2498_vm0, %v2497_v0 }
 0x39a   : > { %2153 = vmatmul.mubr.msk.bf16.vlgmr.msra.gmra.mxu0 %vm330_vm1, %v2738_v7  ;;  %2156 = vmatprep.subr.bf16.mxu1 %v2497_v0 }
 0x39b   : > { %2165 = vmatpush3.bf16.msra.mxu0 %v2793_v49  ;;  %2168 = vmatprep.mubr.msk.bf16.mxu0 %vm2498_vm0, %v2497_v0 }
 0x39c   : > { %2166 = vmatprep.subr.bf16.mxu0 %v2497_v0 }
 0x39f   : > { %2167 = vmatpush3.bf16.msra.mxu0 %v2799_v52 }
 0x3a0   : > { %2147 = vmatmul.mubr.msk.bf16.vlgmr.msra.gmra.mxu1 %vm330_vm1, %v2738_v7  ;;  %2180 = vmatprep.subr.bf16.mxu0 %v2497_v0 }
 0x3a1   : > { %2157 = vmatpush3.bf16.msra.mxu1 %v2793_v49  ;;  %2160 = vmatprep.mubr.msk.bf16.mxu1 %vm2498_vm0, %v2497_v0 }
 0x3a2   : > { %2158 = vmatprep.subr.bf16.mxu1 %v2497_v0 }
 0x3a5   : > { %2159 = vmatpush3.bf16.msra.mxu1 %v2799_v52 }
 0x3a6   : > { %2172 = vmatprep.subr.bf16.mxu1 %v2497_v0 }
 0x44a   : > { %v1106_v41 = vpop.f32.mrf.mxu0 }
 0x44c   : > { %v2128_v42 = vpop.f32.mrf.mxu0 }
 0x44e   : > { %v1109_v45 = vpop.f32.mrf.mxu0 }
 0x450   : > { %v1062_v21 = vpop.f32.mrf.mxu1  ;;  %v2129_v23 = vpop.f32.mrf.mxu0 }
 0x451   : > { %v1107_v24 = vadd.f32 %v1106_v41, %v1062_v21 }
 0x452   : > { %v2120_v25 = vpop.f32.mrf.mxu1  ;;  %v1198_v26 = vpop.f32.mrf.mxu0 }
 0x454   : > { %v1065_v27 = vpop.f32.mrf.mxu1  ;;  %v2142_v28 = vpop.f32.mrf.mxu0 }
 0x455   : > { %v1110_v30 = vadd.f32 %v1109_v45, %v1065_v27 }
 0x456   : > { %v2121_v31 = vpop.f32.mrf.mxu1  ;;  %v1201_v34 = vpop.f32.mrf.mxu0 }
 0x458   : > { %v1147_v35 = vpop.f32.mrf.mxu1  ;;  %v2143_v36 = vpop.f32.mrf.mxu0 }
 0x459   : > { %v2964_v37 = vadd.f32 %v1147_v35, %v1107_v24 }
 0x45a   : > { %v2136_v38 = vpop.f32.mrf.mxu1  ;;  %v1280_v48 = vpop.f32.mrf.mxu0 }
 0x45b   : > { %v1702_v50 = vsub.f32 %v2964_v37, %v2900_v39 }
 0x45c   : > { %v1150_v53 = vpop.f32.mrf.mxu1  ;;  %v2154_v54 = vpop.f32.mrf.mxu0 }
 0x45d   : > { %v2968_v55 = vadd.f32 %v1150_v53, %v1110_v30 }
 0x45e   : > { %v2137_v58 = vpop.f32.mrf.mxu1  ;;  %v1283_v61 = vpop.f32.mrf.mxu0 }
 0x45f   : > { %v1703_v2 = vsub.f32 %v2968_v55, %v2913_v56 }
 0x460   : > { %v1239_v3 = vpop.f32.mrf.mxu1  ;;  %v2155_v4 = vpop.f32.mrf.mxu0 }
 0x461   : > { %v1240_v6 = vadd.f32 %v1239_v3, %v1198_v26 }
 0x462   : > { %v2148_v5 = vpop.f32.mrf.mxu1 }
 0x463   : > { %v1287_v1 = vadd.f32 %v1280_v48, %v1240_v6  ;;  %v1726_v48 = vadd.f32 0.0001, %v2909_v51 }
 0x464   : > { %v1242_v8 = vpop.f32.mrf.mxu1 }
 0x465   : > { %v1243_v9 = vadd.f32 %v1242_v8, %v1201_v34 }
 0x466   : > { %v2149_v10 = vpop.f32.mrf.mxu1 }
 0x467   : > { %v1288_v11 = vadd.f32 %v1283_v61, %v1243_v9 }
 0x469   : > { %v1289_v12 = vpack.c.bf16 %v1288_v11, %v1287_v1 }
 0x46b   : > { %v1290_v13 = vunpack.c.l.bf16 %v1289_v12  ;;  %v1291_v14 = vunpack.c.h.bf16 %v1289_v12  ;;  %2169 = vmatmul.mubr.msk.bf16.vlgmr.msra.gmra.mxu0 %vm486_vm2, %v1289_v12 }
 0x46c   : > { %2181 = vmatpush3.bf16.msra.mxu0 %v2762_v33  ;;  %2182 = vmatprep.mubr.msk.bf16.mxu0 %vm2498_vm0, %v2497_v0 }
 0x46d   : > { %v1292_v15 = vsub.f32 %v1287_v1, %v1290_v13  ;;  %v1293_v16 = vsub.f32 %v1288_v11, %v1291_v14  ;;  %2192 = vmatprep.subr.bf16.mxu0 %v2497_v0 }
 0x46f   : > { %v1294_v19 = vpack.c.bf16 %v1293_v16, %v1292_v15 }
 0x471   : > { %2161 = vmatmul.mubr.msk.bf16.vlgmr.msra.gmra.mxu1 %vm486_vm2, %v1294_v19 }
 0x472   : > { %2173 = vmatpush3.bf16.msra.mxu1 %v2807_v57  ;;  %2176 = vmatprep.mubr.msk.bf16.mxu1 %vm2498_vm0, %v2497_v0 }
 0x473   : > { %2183 = vmatmul.mubr.msk.bf16.vlgmr.msra.gmra.mxu0 %vm330_vm1, %v2756_v29  ;;  %2174 = vmatprep.subr.bf16.mxu1 %v2497_v0 }
 0x474   : > { %2193 = vmatpush3.bf16.msra.mxu0 %v1433_v46  ;;  %2194 = vmatprep.mubr.msk.bf16.mxu0 %vm2498_vm0, %v2497_v0 }
 0x475   : > { %2206 = vmatprep.subr.bf16.mxu0 %v2497_v0 }
 0x476   : > { %2175 = vmatpush3.bf16.msra.mxu1 %v2811_v62 }
 0x477   : > { %2186 = vmatprep.subr.bf16.mxu1 %v2497_v0 }
 0x479   : > { %2177 = vmatmul.mubr.msk.bf16.vlgmr.msra.gmra.mxu1 %vm486_vm2, %v1289_v12 }
 0x47a   : > { %2187 = vmatpush3.bf16.msra.mxu1 %v2762_v33  ;;  %2188 = vmatprep.mubr.msk.bf16.mxu1 %vm2498_vm0, %v2497_v0 }
 0x47b   : > { %2195 = vmatmul.mubr.msk.bf16.vlgmr.msra.gmra.mxu0 %vm330_vm1, %v2738_v7  ;;  %2198 = vmatprep.subr.bf16.mxu1 %v2497_v0 }
 0x47c   : > { %2207 = vmatpush3.bf16.msra.mxu0 %v2793_v49  ;;  %2210 = vmatprep.mubr.msk.bf16.mxu0 %vm2498_vm0, %v2497_v0 }
 0x47d   : > { %2208 = vmatprep.subr.bf16.mxu0 %v2497_v0 }
 0x480   : > { %2209 = vmatpush3.bf16.msra.mxu0 %v2799_v52 }
 0x481   : > { %2189 = vmatmul.mubr.msk.bf16.vlgmr.msra.gmra.mxu1 %vm330_vm1, %v2738_v7 }
 0x482   : > { %2199 = vmatpush3.bf16.msra.mxu1 %v2793_v49  ;;  %2202 = vmatprep.mubr.msk.bf16.mxu1 %vm2498_vm0, %v2497_v0 }
 0x483   : > { %2200 = vmatprep.subr.bf16.mxu1 %v2497_v0 }
 0x486   : > { %2201 = vmatpush3.bf16.msra.mxu1 %v2799_v52 }
 0x487   : > { %2214 = vmatprep.subr.bf16.mxu1 %v2497_v0 }
 0x52b   : > { %v1376_v29 = vpop.f32.mrf.mxu0 }
 0x52d   : > { %v2170_v33 = vpop.f32.mrf.mxu0 }
 0x52f   : > { %v1379_v43 = vpop.f32.mrf.mxu0 }
 0x531   : > { %v1332_v44 = vpop.f32.mrf.mxu1  ;;  %v2171_v46 = vpop.f32.mrf.mxu0 }
 0x532   : > { %v1377_v22 = vadd.f32 %v1376_v29, %v1332_v44 }
 0x533   : > { %v2162_v17 = vpop.f32.mrf.mxu1  ;;  %v1468_v18 = vpop.f32.mrf.mxu0 }
 0x535   : > { %v1335_v7 = vpop.f32.mrf.mxu1  ;;  %v2184_v20 = vpop.f32.mrf.mxu0 }
 0x536   : > { %v1380_v49 = vadd.f32 %v1379_v43, %v1335_v7 }
 0x537   : > { %v2163_v32 = vpop.f32.mrf.mxu1  ;;  %v1471_v41 = vpop.f32.mrf.mxu0 }
 0x539   : > { %v1417_v42 = vpop.f32.mrf.mxu1  ;;  %v2185_v45 = vpop.f32.mrf.mxu0 }
 0x53a   : > { %v1424_v21 = vadd.f32 %v1417_v42, %v1377_v22  ;;  %v1719_v42 = vmul.f32 2.0, %v2918_v60 }
 0x53b   : > { %v2178_v23 = vpop.f32.mrf.mxu1  ;;  %v1550_v52 = vpop.f32.mrf.mxu0 }
 0x53c   : > { %v1704_v24 = vsub.f32 %v1424_v21, %v2902_v40 }
 0x53d   : > { %v1420_v25 = vpop.f32.mrf.mxu1  ;;  %v2196_v26 = vpop.f32.mrf.mxu0 }
 0x53e   : > { %v1712_v27 = vadd.f32 %v1704_v24, %v1702_v50  ;;  %v1425_v28 = vadd.f32 %v1420_v25, %v1380_v49  ;;  %v1727_v50 = vadd.f32 0.0001, %v2922_v63  ;;  %v1721_v26 = vadd.f32 0.0001, %v1719_v42 }
 0x53f   : > { %v2179_v30 = vpop.f32.mrf.mxu1  ;;  %v1553_v31 = vpop.f32.mrf.mxu0 }
 0x540   : > { %v1714_v34 = vadd.f32 0.0009, %v1712_v27  ;;  %v1705_v35 = vsub.f32 %v1425_v28, %v2915_v59 }
 0x541   : > { %v1509_v36 = vpop.f32.mrf.mxu1  ;;  %v2197_v38 = vpop.f32.mrf.mxu0 }
 0x542   : > { %v1716_v53 = vadd.f32 1e-06, %v1714_v34  ;;  %v1713_v40 = vadd.f32 %v1705_v35, %v1703_v2  ;;  %v1510_v39 = vadd.f32 %v1509_v36, %v1468_v18 }
 0x543   : > { %v2190_v54 = vpop.f32.mrf.mxu1 }
 0x544   : > { %v1728_v58 = vmul.f32 %v1726_v48, %v1716_v53  ;;  %v1715_v61 = vadd.f32 0.0009, %v1713_v40  ;;  %v1557_v6 = vadd.f32 %v1550_v52, %v1510_v39 }
 0x545   : > { %v1512_v37 = vpop.f32.mrf.mxu1 }
 0x546   : > { %v1717_v3 = vadd.f32 1e-06, %v1715_v61  ;;  %v1513_v4 = vadd.f32 %v1512_v37, %v1471_v41  ;;  %2301 = vrcp.f32 %v1728_v58 }
 0x547   : > { %v2191_v5 = vpop.f32.mrf.mxu1 }
 0x548   : > { %v1729_v59 = vmul.f32 %v1727_v50, %v1717_v3  ;;  %v1558_v8 = vadd.f32 %v1553_v31, %v1513_v4 }
 0x54a   : > { %v1559_v9 = vpack.c.bf16 %v1558_v8, %v1557_v6  ;;  %2303 = vrcp.f32 %v1729_v59 }
 0x54c   : > { %v1560_v51 = vunpack.c.l.bf16 %v1559_v9  ;;  %v1561_v10 = vunpack.c.h.bf16 %v1559_v9  ;;  %2211 = vmatmul.mubr.msk.bf16.vlgmr.msra.gmra.mxu0 %vm486_vm2, %v1559_v9 }
 0x54e   : > { %v1562_v56 = vsub.f32 %v1557_v6, %v1560_v51  ;;  %v1563_v55 = vsub.f32 %v1558_v8, %v1561_v10 }
 0x550   : > { %v1564_v2 = vpack.c.bf16 %v1563_v55, %v1562_v56 }
 0x552   : > { %2203 = vmatmul.mubr.msk.bf16.vlgmr.msra.gmra.mxu1 %vm486_vm2, %v1564_v2 }
 0x553   : > { %2215 = vmatpush3.bf16.msra.mxu1 %v2807_v57  ;;  %2218 = vmatprep.mubr.msk.bf16.mxu1 %vm2498_vm0, %v2497_v0  ;;  %v2302_v16 = vpop.eup %2301 }
 0x554   : > { %2216 = vmatprep.subr.bf16.mxu1 %v2497_v0  ;;  %v1732_v43 = vmul.f32 %v2302_v16, %v1728_v58 }
 0x556   : > { %v1734_v49 = vsub.f32 2.0, %v1732_v43 }
 0x557   : > { %2217 = vmatpush3.bf16.msra.mxu1 %v2811_v62  ;;  %v2304_v0 = vpop.eup %2303  ;;  %v1718_v62 = vmul.f32 2.0, %v2905_v47 }
 0x558   : > { %v1733_v20 = vmul.f32 %v2304_v0, %v1729_v59  ;;  %v1736_v25 = vmul.f32 %v2302_v16, %v1734_v49 }
 0x559   : > { %v1720_v41 = vadd.f32 0.0001, %v1718_v62 }
 0x55a   : > { %2219 = vmatmul.mubr.msk.bf16.vlgmr.msra.gmra.mxu1 %vm486_vm2, %v1559_v9  ;;  %v1735_v24 = vsub.f32 2.0, %v1733_v20 }
 0x55c   : > { %v1737_v30 = vmul.f32 %v2304_v0, %v1735_v24 }
 0x60c   : > { %v1646_v63 = vpop.f32.mrf.mxu0 }
 0x60e   : > { %v2212_v1 = vpop.f32.mrf.mxu0 }
 0x610   : > { %v1649_v11 = vpop.f32.mrf.mxu0 }
 0x612   : > { %v1602_v12 = vpop.f32.mrf.mxu1  ;;  %v2213_v13 = vpop.f32.mrf.mxu0 }
 0x613   : > { %v1647_v19 = vadd.f32 %v1646_v63, %v1602_v12 }
 0x614   : > { %v2204_v14 = vpop.f32.mrf.mxu1 }
 0x616   : > { %v1605_v15 = vpop.f32.mrf.mxu1 }
 0x617   : > { %v1650_v46 = vadd.f32 %v1649_v11, %v1605_v15 }
 0x618   : > { %v2205_v57 = vpop.f32.mrf.mxu1 }
 0x61a   : > { %v1687_v29 = vpop.f32.mrf.mxu1 }
 0x61b   : > { %v1694_v33 = vadd.f32 %v1687_v29, %v1647_v19 }
 0x61c   : > { %v2220_v44 = vpop.f32.mrf.mxu1 }
 0x61d   : > { %v1706_v22 = vsub.f32 %v1694_v33, %v2905_v47 }
 0x61e   : > { %v1690_v17 = vpop.f32.mrf.mxu1 }
 0x61f   : > { %v1708_v18 = vmul.f32 2.0, %v1706_v22  ;;  %v1695_v7 = vadd.f32 %v1690_v17, %v1650_v46 }
 0x620   : > { %v2221_v32 = vpop.f32.mrf.mxu1 }
 0x621   : > { %v1710_v45 = vadd.f32 0.0009, %v1708_v18  ;;  %v1707_v21 = vsub.f32 %v1695_v7, %v2918_v60 }
 0x623   : > { %v1722_v23 = vmul.f32 %v1720_v41, %v1710_v45  ;;  %v1709_v52 = vmul.f32 2.0, %v1707_v21 }
 0x625   : > { %v1711_v27 = vadd.f32 0.0009, %v1709_v52  ;;  %v1738_v28 = vmul.f32 %v1736_v25, %v1722_v23 }
 0x627   : > { %v1723_v47 = vmul.f32 %v1721_v26, %v1711_v27  ;;  %v1740_v34 = vsel %vm486_vm2, %v1738_v28, 0.0 }
 0x629   : > { %v1739_v31 = vmul.f32 %v1737_v30, %v1723_v47 }
 0x62b   : > { %v1741_v35 = vsel %vm486_vm2, %v1739_v31, 0.0 }
 0x62c   : > { %v1742_v36 = vadd.f32 %v1741_v35, %v1740_v34 }
 0x62e   : > { %1743 = vadd.xlane.f32.xlu0 %v1742_v36 }
 0x6b7   : > { %v1744_v38 = vpop.xlane.xlu0 %1743 }
 0x6b8   : > { %v1745_v60 = vrot.slane %v1744_v38, 4 }
 0x6ba   : > { %v1746_v48 = vadd.f32 %v1745_v60, %v1744_v38 }
 0x6bc   : > { %v1747_v53 = vrot.slane %v1746_v48, 2 }
 0x6be   : > { %v1748_v40 = vadd.f32 %v1747_v53, %v1746_v48 }
 0x6c0   : > { %v1749_v54 = vrot.slane %v1748_v40, 1 }
 0x6c2   : > { %v1750_v58 = vadd.f32 %v1749_v54, %v1748_v40 }
 0x6c4   : > { %2222 = vpush %v1750_v58 }
 0x6f5   : > { %s2223_s25 = spop %2222 }
 0x6f6   : > { %v1752_v61 = vstv %s2223_s25 }
 0x6f7   : > { %1753 = vst [vmem:[%s286_s30] sm:$0xff] %v1752_v61 }
 0x6f8   : > { %2426 = shalt.err (!%p2423_p4)
}
 0x6f9   : > { %s2427_s5 = scalar_lea.hbm %s1766_s7, 128  ;;  %s2431_s23 = scalar_lea.hbm %s3081_s4, 512 }
 0x6fa   : > { %p2428_p3 = scmp.ne.s32.totalorder %s1766_s7, %s2427_s5  ;;  %p2432_p2 = scmp.lt.s32.totalorder %s1766_s7, %s3081_s4 }
 0x6fb   : > { %p2433_p6 = scmp.lt.s32.totalorder %s2431_s23, %s2427_s5 }
 0x6fc   : > { %p2429_p7 = pnand %p2428_p3, %p3104_p0 }
 0x6fd   : > { %p2434_p11 = por %p2433_p6, %p2432_p2 }
 0x6fe   : > { %p2430_p8 = pneg %p2429_p7 }
 0x700   : > { %p2435_p13 = pnand %p2434_p11, %p2430_p8 }
 0x702   : > { %2438 = shalt.err (!%p2435_p13)
}
 0x703   : > { %2236 = dma.vmem_to_hbm [thread:$0]  (%p3104_p0), %s3038_s6, 128, %s1766_s7, %s1755_s28  }
 0x704 PF: > { %p2261_p5 = scmp.ge.s32.totalorder %s2489_s18, 2  ;;  %s1780_s27 = sand.u32 1, %s2477_s15  }
 0x705   : > { %p3105_p10 = scmp.ne.s32.totalorder %s3091_s22, 0  ;;  %s1781_s30 = scalar_lea.sflag [#allocation4], %s1780_s27 }
 0x707   : > { %p2253_p9 = pnand %p2261_p5, %p3105_p10 }
 0x709   : > { %p2254_p12 = pneg %p2253_p9 }
 0x70b   : > { %2472 = dma.done.wait (%p2254_p12), %s1781_s30, 128  }
 0x70c   : > { %2474 = vsyncadd (%p2254_p12), %s1781_s30, 4294967168  ;;  %p21_p1 = scmp.ge.s32.totalorder %s2603_s11, 6   ;;  %s3106_s15 = smov %s2481_s16 }
 0x70d   : > { %s3107_s16 = smov %s2485_s17  ;;  %s3108_s17 = smov %s2619_s20 }
 0x70e   : > { %s3109_s18 = smov %s2603_s11  ;;  %23 = sbr.rel (!%p21_p1) target bundleno = 10 (0xa), region = 102 }
 0x713   :  { %1786 = vsyncpa [#allocation3], 1 }
 0x714   :  { %1788 = vsyncpa [#allocation3 + $0x1], 1 }
 0x715   :  { %1789 = vsyncpa [#allocation6], 1 }
 0x716   :  { %1791 = vsyncpa [#allocation6 + $0x1], 1 }
 0x717   :  { %1792 = vsyncpa [#allocation9], 1 }
 0x718   :  { %1793 = vsyncpa [#allocation4], 1 }
 0x719   :  { %1795 = vsyncpa [#allocation4 + $0x1], 1 }

</bundles_post_ra>
